<compile_context>
chip_gen: v6e
topology: v6e:2x2x1
jax: 0.10.0
libtpu: 0.0.40
codegen_flags: <defaults>
</compile_context>

<pallas_src>
import functools

import numpy as np
import jax
import jax.numpy as jnp
from jax.experimental import pallas as pl
from jax.experimental.pallas import tpu as pltpu

_LANE = 128


def _cdiv(a, b):
    return -(-a // b)


def _sigmoid(z):
    # logistic(z) == 0.5 * tanh(0.5 * z) + 0.5 : one EUP push instead of
    # exp + divide, halving per-step EUP latency on the serial recurrence.
    return 0.5 * jnp.tanh(0.5 * z) + 0.5


def _param_layout(dim_in, sys_dim, m):
    """Python-int offsets of every packed scalar in the flat SMEM table."""
    n_steps = sys_dim - 1
    n_pre = 1 + n_steps
    off = {"wpre": 0, "bpre": dim_in * n_pre,
           "combo": [], "padd": [], "bprime": [],
           "lgate": [], "rbias": [], "normal": []}
    pos = dim_in * n_pre + n_pre
    for i in range(n_steps):
        d, K = i + 2, i + 1
        ncol = d + m + 1
        off["combo"].append(pos)
        pos += K * ncol
        off["padd"].append(pos)
        pos += d
        off["bprime"].append(pos)
        pos += m
        off["lgate"].append(pos)
        pos += m
        off["rbias"].append(pos)
        pos += m
        off["normal"].append(pos)
        pos += d
    off["size"] = pos
    return off


def _orthogonal_kernel(n_steps, sys_dim, m, dim_in, n_windows, WR,
                       domain_lo, domain_range, off,
                       prm_ref, x_ref, out_ref):
    """Recurrence in (feature-row, batch-sublane, batch-lane) layout.

    prm_ref : (P,)                 f32 SMEM  -- flat parameter table (scalar reads)
    x_ref   : (dim_in, TBR, 128)   f32 VMEM  -- batch folded onto (sublane, lane)
    out_ref : (sys_dim, TBR, 128)  f32 VMEM
    """
    n_pre = 1 + n_steps

    def w(idx):                      # static-address scalar load from SMEM
        return prm_ref[idx]

    # Static unroll over batch windows (equivalent to
    # lax.fori_loop(..., unroll=True) but with literal, lane-aligned slice
    # starts so every VMEM access stays static for Mosaic).
    for j in range(n_windows):
        jr = j * WR
        xr = [x_ref[k, jr:jr + WR, :] for k in range(dim_in)]   # (WR, 128) each

        # Pre-loop linear (off the serial chain): column 0 = first-point
        # logit; column 1+i = x @ wnu_x_i (s_i@wnu_p_i + bnu_i in the bias).
        # dim_in is tiny here, so scalar*tile FMAs on the VPU; for dim_in
        # >= ~64 this block should instead be one MXU matmul on a
        # batch-major tile (its latency is hidden off the recurrence).
        pre = []
        for c in range(n_pre):
            acc = xr[0] * w(off["wpre"] + c)
            for k in range(1, dim_in):
                acc = acc + xr[k] * w(off["wpre"] + k * n_pre + c)
            pre.append(acc + w(off["bpre"] + c))

        # nn_first_point: sigmoid mapped onto [lo, lo + range].
        cur = [_sigmoid(pre[0]) * domain_range + domain_lo]

        for i in range(n_steps):
            d = i + 2                   # system dim after this step
            K = i + 1                   # active rows of cur
            ncol = d + m + 1
            cb = off["combo"][i]

            # p = s + cur @ RT
            p_rows = []
            for r in range(d):
                acc = cur[0] * w(cb + r)
                for k in range(1, K):
                    acc = acc + cur[k] * w(cb + k * ncol + r)
                p_rows.append(acc + w(off["padd"][i] + r))

            # _find_alpha_range fused with pivot = p @ A.T.  The 1/products
            # factor and s@A.T are folded into the packed coefficients, the
            # products-sign tests into lgate / rbias, so each of the m
            # constraints is a K-FMA contraction plus a few VPU ops and a
            # running row-wise max / min (no cross-lane reduction).
            left = None
            right = None
            for t in range(m):
                c = d + t
                acc = cur[0] * w(cb + c)
                for k in range(1, K):
                    acc = acc + cur[k] * w(cb + k * ncol + c)
                alpha = w(off["bprime"][i] + t) - acc
                lc = jnp.maximum(alpha, 0.0) * w(off["lgate"][i] + t)
                rc = jnp.where(alpha < 0.0, jnp.inf, alpha) + w(off["rbias"][i] + t)
                left = lc if left is None else jnp.maximum(left, lc)
                right = rc if right is None else jnp.minimum(right, rc)

            # nu network: x-part was precomputed in `pre`, p-part here.
            c = d + m
            acc = cur[0] * w(cb + c)
            for k in range(1, K):
                acc = acc + cur[k] * w(cb + k * ncol + c)
            znu = pre[i + 1] + acc
            # NOTE: if no constraint bounds the interval from above, right is
            # +inf and nu/cur become inf, exactly like the reference forward.
            # Trained checkpoints must guarantee a bounding row (the packed
            # synthetic geometry always has one).
            nu = _sigmoid(znu) * (right - left) + left

            # orthogonal update: cur = p + nu * normal
            nb = off["normal"][i]
            cur = [p_rows[r] + nu * w(nb + r) for r in range(d)]

        # Lane-dense stores; unmasked full-vreg vst when WR == 8.
        for r in range(sys_dim):
            out_ref[r, jr:jr + WR, :] = cur[r]


def _choose_tiling(batch):
    """Return (TBR, WR): 128-lane batch rows per grid step / per inner window."""
    rows = _cdiv(batch, _LANE)
    if rows <= 8:
        return rows, rows                 # one tile, one window
    WR = 8                                # 8 x 128 = one full vreg per feature row
    n_windows = _cdiv(rows, WR)
    # Large tiles amortize the ~0.35us per-grid-step overhead; keep >= 2 grid
    # steps so dimension_semantics=("parallel",) can spread them over both
    # v7x TensorCores; cap at 64 rows (8192 batch elements) per step.  VMEM
    # footprint is only tens of KB everywhere -- the real per-window limit is
    # vreg pressure, which WR = 8 keeps at ~25 live vregs.
    grid_target = min(8, max(2, n_windows // 8))
    tbw = min(8, _cdiv(n_windows, grid_target))
    return tbw * WR, WR


def orthogonal_net_forward(x, packed):
    """OrthogonalNet forward.  x: (B, dim_in) -> (B, sys_dim)."""
    B, dim_in = x.shape
    S = packed["sys_dim"]
    n_steps = packed["n_steps"]
    m = packed["m"]
    assert dim_in == packed["dim_in"], "x has wrong shape"

    TBR, WR = _choose_tiling(B)
    Bpad = _cdiv(B, TBR * _LANE) * TBR * _LANE
    rows = Bpad // _LANE

    # Batch goes onto the (sublane, lane) axes; features become leading rows.
    # This transpose/reshape of the tiny (B, dim_in) input is one cheap pass
    # (dim_in*B*4 bytes); callers that can produce (dim_in, B) directly (or
    # jit this wrapper so XLA fuses it into the producer) avoid even that.
    xt = jnp.transpose(x.astype(jnp.float32))
    if Bpad != B:
        xt = jnp.pad(xt, ((0, 0), (0, Bpad - B)))
    x3 = xt.reshape(dim_in, rows, _LANE)

    kernel = functools.partial(
        _orthogonal_kernel, n_steps, S, m, dim_in, TBR // WR, WR,
        packed["domain_lo"], packed["domain_range"], packed["offsets"])

    out3 = pl.pallas_call(
        kernel,
        out_shape=jax.ShapeDtypeStruct((S, rows, _LANE), jnp.float32),
        grid_spec=pltpu.PrefetchScalarGridSpec(
            num_scalar_prefetch=0,
            grid=(rows // TBR,),
            in_specs=[
                # Flat parameter table (a few hundred floats): 1-D in SMEM so
                # the [8,128] SMEM padding rule cannot blow it up; every read
                # in the kernel is a static-address scalar load.
                pl.BlockSpec(memory_space=pltpu.MemorySpace.SMEM),
                pl.BlockSpec((dim_in, TBR, _LANE), lambda i: (0, i, 0)),
            ],
            out_specs=pl.BlockSpec((S, TBR, _LANE), lambda i: (0, i, 0)),
        ),
        compiler_params=pltpu.CompilerParams(
            dimension_semantics=("parallel",)),
    )(packed["flat"], x3)

    # Back to the module's (B, sys_dim) convention; consumers that accept
    # (sys_dim, B) can skip this transpose.
    return jnp.transpose(out3.reshape(S, Bpad)[:, :B])


def pack_params(params, dim_in):
    """Hoist every parameter-only matmul / divide / sign test and pack the
    results into one flat float32 table read as SMEM scalars by the kernel."""
    steps = params["steps"]
    n_steps = len(steps)
    S = n_steps + 1
    m = int(np.asarray(steps[0]["b"]).shape[-1])
    n_pre = 1 + n_steps
    f32 = np.float32

    off = _param_layout(dim_in, S, m)
    flat = np.zeros((off["size"],), f32)

    wpre = np.zeros((dim_in, n_pre), f32)
    bpre = np.zeros((n_pre,), f32)
    wpre[:, 0] = np.asarray(params["w0"], f32)[:, 0]
    bpre[0] = np.asarray(params["b0"], f32)[0, 0]

    for i, st in enumerate(steps):
        d, K = i + 2, i + 1
        ncol = d + m + 1
        RT = np.asarray(st["RT"], f32)             # (K, d)
        s = np.asarray(st["s"], f32)[0]            # (d,)
        normal = np.asarray(st["normal"], f32)[0]  # (d,)
        AT = np.asarray(st["AT"], f32)             # (d, m)
        b = np.asarray(st["b"], f32)[0]            # (m,)
        wnu_x = np.asarray(st["wnu_x"], f32)       # (dim_in, 1)
        wnu_p = np.asarray(st["wnu_p"], f32)       # (d, 1)
        bnu = np.asarray(st["bnu"], f32)           # (1, 1)

        wpre[:, i + 1] = wnu_x[:, 0]
        bpre[i + 1] = float(s @ wnu_p[:, 0] + bnu[0, 0])

        products = normal @ AT                     # (m,)
        # Real checkpoints must keep |A @ normal| bounded away from zero;
        # otherwise both the original divide and this reciprocal blow up.
        assert np.all(np.abs(products) > 1e-6), "degenerate constraint normal"
        inv = (1.0 / products).astype(f32)

        combo = np.zeros((K, ncol), f32)           # [RT | (RT@AT)/prod | RT@wnu_p]
        combo[:, 0:d] = RT
        combo[:, d:d + m] = (RT @ AT) * inv[None, :]
        combo[:, d + m] = (RT @ wnu_p)[:, 0]
        flat[off["combo"][i]:off["combo"][i] + K * ncol] = combo.reshape(-1)

        flat[off["padd"][i]:off["padd"][i] + d] = s
        flat[off["bprime"][i]:off["bprime"][i] + m] = (b - s @ AT) * inv
        flat[off["lgate"][i]:off["lgate"][i] + m] = (products > 0).astype(f32)
        flat[off["rbias"][i]:off["rbias"][i] + m] = np.where(
            products < 0, 0.0, np.inf).astype(f32)
        flat[off["normal"][i]:off["normal"][i] + d] = normal

    flat[off["wpre"]:off["wpre"] + dim_in * n_pre] = wpre.reshape(-1)
    flat[off["bpre"]:off["bpre"] + n_pre] = bpre

    return dict(
        sys_dim=S, n_steps=n_steps, m=m, dim_in=dim_in,
        domain_lo=float(params["domain_lo"]),
        domain_range=float(params["domain_range"]),
        offsets=off, flat=jnp.asarray(flat),
    )


def init_params(dim_in, sys_dim, n_constraints, seed=1):
    """Deterministic synthetic parameters / geometry (init-time only)."""
    rng = np.random.default_rng(seed)
    f32 = np.float32
    domain_lo, domain_hi = -1.0, 2.0

    params = dict(
        domain_lo=float(domain_lo),
        domain_range=float(domain_hi - domain_lo),
        w0=jnp.asarray(rng.normal(scale=0.5, size=(dim_in, 1)), f32),
        b0=jnp.asarray(rng.normal(scale=0.1, size=(1, 1)), f32),
        steps=[],
    )

    for i in range(sys_dim - 1):
        d = i + 2
        a = rng.normal(size=(d,))
        b_scalar = rng.normal()
        s_vec = b_scalar * a / (np.linalg.norm(a) ** 2)
        _, _, v = np.linalg.svd(a[np.newaxis, :])
        R = v[1:].T
        normal = a / np.linalg.norm(a)

        rows = []
        while len(rows) < n_constraints - 1:
            g = rng.normal(size=(d,))
            g = g / np.linalg.norm(g)
            if abs(float(g @ normal)) >= 0.3:
                rows.append(g)
        A = np.concatenate([np.stack(rows, axis=0), -normal[np.newaxis, :]], axis=0)
        b_vec = np.concatenate(
            [rng.normal(scale=0.5, size=(n_constraints - 1,)), np.array([-10.0])])

        params["steps"].append(dict(
            RT=jnp.asarray(R.T, f32),
            s=jnp.asarray(s_vec[np.newaxis, :], f32),
            normal=jnp.asarray(normal[np.newaxis, :], f32),
            AT=jnp.asarray(A.T, f32),
            b=jnp.asarray(b_vec[np.newaxis, :], f32),
            wnu_x=jnp.asarray(rng.normal(scale=0.5, size=(dim_in, 1)), f32),
            wnu_p=jnp.asarray(rng.normal(scale=0.5, size=(d, 1)), f32),
            bnu=jnp.asarray(rng.normal(scale=0.1, size=(1, 1)), f32),
        ))
    return params


def reference_forward(x, params):
    """Pure-numpy float32 reference replicating the PyTorch forward semantics."""
    x = np.asarray(x, np.float32)
    w0 = np.asarray(params["w0"])
    b0 = np.asarray(params["b0"])
    cur = 1.0 / (1.0 + np.exp(-(x @ w0 + b0)))
    cur = cur * np.float32(params["domain_range"]) + np.float32(params["domain_lo"])
    for st in params["steps"]:
        RT = np.asarray(st["RT"])
        s = np.asarray(st["s"])
        n = np.asarray(st["normal"])
        AT = np.asarray(st["AT"])
        bv = np.asarray(st["b"])
        p = s + cur @ RT
        products = n @ AT
        with np.errstate(divide="ignore", invalid="ignore"):
            alphas = (bv - p @ AT) / products
        neg = alphas < 0
        left_cut = np.where(neg | (products <= 0), np.float32(0.0), alphas)
        left = left_cut.max(axis=-1, keepdims=True)
        right_cut = np.where(neg | (products >= 0), np.float32(np.inf), alphas)
        right = right_cut.min(axis=-1, keepdims=True)
        z = x @ np.asarray(st["wnu_x"]) + p @ np.asarray(st["wnu_p"]) + np.asarray(st["bnu"])
        nu = (1.0 / (1.0 + np.exp(-z))) * (right - left) + left
        cur = p + nu * n
    return cur


if __name__ == "__main__":
    dim_in = 4
    sys_dim = 4          # output dimension; sys_dim - 1 iterative steps
    n_constraints = 6
    batch = 8

    params = init_params(dim_in, sys_dim, n_constraints, seed=1)
    packed = pack_params(params, dim_in)
    x = jax.random.normal(jax.random.PRNGKey(0), (batch, dim_in), dtype=jnp.float32)

    out = orthogonal_net_forward(x, packed)
    out = jax.block_until_ready(out)

    ref = reference_forward(np.asarray(x), params)
    assert out.shape == (batch, sys_dim), out.shape
    assert np.all(np.isfinite(np.asarray(out))), "non-finite kernel output"
    assert np.allclose(np.asarray(out), ref, rtol=5e-3, atol=5e-3), (
        np.max(np.abs(np.asarray(out) - ref)))

    print("KERNEL_OK")
</pallas_src>

<mosaic_0001>
module attributes {stable_mosaic.version = 11 : i64} {
  func.func @_orthogonal_kernel(%arg0: i32, %arg1: memref<154xf32, #tpu.memory_space<smem>>, %arg2: memref<4x1x128xf32, #tpu.memory_space<vmem>>, %arg3: memref<4x1x128xf32, #tpu.memory_space<vmem>>) attributes {dimension_semantics = [#tpu.dimension_semantics<parallel>], iteration_bounds = array<i64: 1>, scalar_prefetch = 0 : i64, scratch_operands = 0 : i64, tpu.core_type = #tpu.core_type<tc>, window_params = [{transform_indices = @transform_0, window_bounds = array<i64: 154>}, {transform_indices = @transform_1, window_bounds = array<i64: 4, 1, 128>}, {transform_indices = @transform_2, window_bounds = array<i64: 4, 1, 128>}]} {
    %c0 = arith.constant 0 : index
    %c0_0 = arith.constant 0 : index
    %c0_1 = arith.constant 0 : index
    %0 = vector.load %arg2[%c0, %c0_0, %c0_1] : memref<4x1x128xf32, #tpu.memory_space<vmem>>, vector<1x1x128xf32>
    %1 = vector.shape_cast %0 : vector<1x1x128xf32> to vector<1x128xf32>
    %c1 = arith.constant 1 : index
    %c0_2 = arith.constant 0 : index
    %c0_3 = arith.constant 0 : index
    %2 = vector.load %arg2[%c1, %c0_2, %c0_3] : memref<4x1x128xf32, #tpu.memory_space<vmem>>, vector<1x1x128xf32>
    %3 = vector.shape_cast %2 : vector<1x1x128xf32> to vector<1x128xf32>
    %c2 = arith.constant 2 : index
    %c0_4 = arith.constant 0 : index
    %c0_5 = arith.constant 0 : index
    %4 = vector.load %arg2[%c2, %c0_4, %c0_5] : memref<4x1x128xf32, #tpu.memory_space<vmem>>, vector<1x1x128xf32>
    %5 = vector.shape_cast %4 : vector<1x1x128xf32> to vector<1x128xf32>
    %c3 = arith.constant 3 : index
    %c0_6 = arith.constant 0 : index
    %c0_7 = arith.constant 0 : index
    %6 = vector.load %arg2[%c3, %c0_6, %c0_7] : memref<4x1x128xf32, #tpu.memory_space<vmem>>, vector<1x1x128xf32>
    %7 = vector.shape_cast %6 : vector<1x1x128xf32> to vector<1x128xf32>
    %c0_8 = arith.constant 0 : index
    %8 = memref.load %arg1[%c0_8] : memref<154xf32, #tpu.memory_space<smem>>
    %9 = vector.broadcast %8 : f32 to vector<1x128xf32>
    %10 = arith.mulf %1, %9 : vector<1x128xf32>
    %c4 = arith.constant 4 : index
    %11 = memref.load %arg1[%c4] : memref<154xf32, #tpu.memory_space<smem>>
    %12 = vector.broadcast %11 : f32 to vector<1x128xf32>
    %13 = arith.mulf %3, %12 : vector<1x128xf32>
    %14 = arith.addf %10, %13 : vector<1x128xf32>
    %c8 = arith.constant 8 : index
    %15 = memref.load %arg1[%c8] : memref<154xf32, #tpu.memory_space<smem>>
    %16 = vector.broadcast %15 : f32 to vector<1x128xf32>
    %17 = arith.mulf %5, %16 : vector<1x128xf32>
    %18 = arith.addf %14, %17 : vector<1x128xf32>
    %c12 = arith.constant 12 : index
    %19 = memref.load %arg1[%c12] : memref<154xf32, #tpu.memory_space<smem>>
    %20 = vector.broadcast %19 : f32 to vector<1x128xf32>
    %21 = arith.mulf %7, %20 : vector<1x128xf32>
    %22 = arith.addf %18, %21 : vector<1x128xf32>
    %c16 = arith.constant 16 : index
    %23 = memref.load %arg1[%c16] : memref<154xf32, #tpu.memory_space<smem>>
    %24 = vector.broadcast %23 : f32 to vector<1x128xf32>
    %25 = arith.addf %22, %24 : vector<1x128xf32>
    %c1_9 = arith.constant 1 : index
    %26 = memref.load %arg1[%c1_9] : memref<154xf32, #tpu.memory_space<smem>>
    %27 = vector.broadcast %26 : f32 to vector<1x128xf32>
    %28 = arith.mulf %1, %27 : vector<1x128xf32>
    %c5 = arith.constant 5 : index
    %29 = memref.load %arg1[%c5] : memref<154xf32, #tpu.memory_space<smem>>
    %30 = vector.broadcast %29 : f32 to vector<1x128xf32>
    %31 = arith.mulf %3, %30 : vector<1x128xf32>
    %32 = arith.addf %28, %31 : vector<1x128xf32>
    %c9 = arith.constant 9 : index
    %33 = memref.load %arg1[%c9] : memref<154xf32, #tpu.memory_space<smem>>
    %34 = vector.broadcast %33 : f32 to vector<1x128xf32>
    %35 = arith.mulf %5, %34 : vector<1x128xf32>
    %36 = arith.addf %32, %35 : vector<1x128xf32>
    %c13 = arith.constant 13 : index
    %37 = memref.load %arg1[%c13] : memref<154xf32, #tpu.memory_space<smem>>
    %38 = vector.broadcast %37 : f32 to vector<1x128xf32>
    %39 = arith.mulf %7, %38 : vector<1x128xf32>
    %40 = arith.addf %36, %39 : vector<1x128xf32>
    %c17 = arith.constant 17 : index
    %41 = memref.load %arg1[%c17] : memref<154xf32, #tpu.memory_space<smem>>
    %42 = vector.broadcast %41 : f32 to vector<1x128xf32>
    %43 = arith.addf %40, %42 : vector<1x128xf32>
    %c2_10 = arith.constant 2 : index
    %44 = memref.load %arg1[%c2_10] : memref<154xf32, #tpu.memory_space<smem>>
    %45 = vector.broadcast %44 : f32 to vector<1x128xf32>
    %46 = arith.mulf %1, %45 : vector<1x128xf32>
    %c6 = arith.constant 6 : index
    %47 = memref.load %arg1[%c6] : memref<154xf32, #tpu.memory_space<smem>>
    %48 = vector.broadcast %47 : f32 to vector<1x128xf32>
    %49 = arith.mulf %3, %48 : vector<1x128xf32>
    %50 = arith.addf %46, %49 : vector<1x128xf32>
    %c10 = arith.constant 10 : index
    %51 = memref.load %arg1[%c10] : memref<154xf32, #tpu.memory_space<smem>>
    %52 = vector.broadcast %51 : f32 to vector<1x128xf32>
    %53 = arith.mulf %5, %52 : vector<1x128xf32>
    %54 = arith.addf %50, %53 : vector<1x128xf32>
    %c14 = arith.constant 14 : index
    %55 = memref.load %arg1[%c14] : memref<154xf32, #tpu.memory_space<smem>>
    %56 = vector.broadcast %55 : f32 to vector<1x128xf32>
    %57 = arith.mulf %7, %56 : vector<1x128xf32>
    %58 = arith.addf %54, %57 : vector<1x128xf32>
    %c18 = arith.constant 18 : index
    %59 = memref.load %arg1[%c18] : memref<154xf32, #tpu.memory_space<smem>>
    %60 = vector.broadcast %59 : f32 to vector<1x128xf32>
    %61 = arith.addf %58, %60 : vector<1x128xf32>
    %c3_11 = arith.constant 3 : index
    %62 = memref.load %arg1[%c3_11] : memref<154xf32, #tpu.memory_space<smem>>
    %63 = vector.broadcast %62 : f32 to vector<1x128xf32>
    %64 = arith.mulf %1, %63 : vector<1x128xf32>
    %c7 = arith.constant 7 : index
    %65 = memref.load %arg1[%c7] : memref<154xf32, #tpu.memory_space<smem>>
    %66 = vector.broadcast %65 : f32 to vector<1x128xf32>
    %67 = arith.mulf %3, %66 : vector<1x128xf32>
    %68 = arith.addf %64, %67 : vector<1x128xf32>
    %c11 = arith.constant 11 : index
    %69 = memref.load %arg1[%c11] : memref<154xf32, #tpu.memory_space<smem>>
    %70 = vector.broadcast %69 : f32 to vector<1x128xf32>
    %71 = arith.mulf %5, %70 : vector<1x128xf32>
    %72 = arith.addf %68, %71 : vector<1x128xf32>
    %c15 = arith.constant 15 : index
    %73 = memref.load %arg1[%c15] : memref<154xf32, #tpu.memory_space<smem>>
    %74 = vector.broadcast %73 : f32 to vector<1x128xf32>
    %75 = arith.mulf %7, %74 : vector<1x128xf32>
    %76 = arith.addf %72, %75 : vector<1x128xf32>
    %c19 = arith.constant 19 : index
    %77 = memref.load %arg1[%c19] : memref<154xf32, #tpu.memory_space<smem>>
    %78 = vector.broadcast %77 : f32 to vector<1x128xf32>
    %79 = arith.addf %76, %78 : vector<1x128xf32>
    %cst = arith.constant 5.000000e-01 : f32
    %80 = vector.broadcast %cst : f32 to vector<1x128xf32>
    %81 = arith.mulf %80, %25 : vector<1x128xf32>
    %82 = math.tanh %81 : vector<1x128xf32>
    %cst_12 = arith.constant 5.000000e-01 : f32
    %83 = vector.broadcast %cst_12 : f32 to vector<1x128xf32>
    %84 = arith.mulf %83, %82 : vector<1x128xf32>
    %cst_13 = arith.constant 5.000000e-01 : f32
    %85 = vector.broadcast %cst_13 : f32 to vector<1x128xf32>
    %86 = arith.addf %84, %85 : vector<1x128xf32>
    %cst_14 = arith.constant 3.000000e+00 : f32
    %87 = vector.broadcast %cst_14 : f32 to vector<1x128xf32>
    %88 = arith.mulf %86, %87 : vector<1x128xf32>
    %cst_15 = arith.constant -1.000000e+00 : f32
    %89 = vector.broadcast %cst_15 : f32 to vector<1x128xf32>
    %90 = arith.addf %88, %89 : vector<1x128xf32>
    %c20 = arith.constant 20 : index
    %91 = memref.load %arg1[%c20] : memref<154xf32, #tpu.memory_space<smem>>
    %92 = vector.broadcast %91 : f32 to vector<1x128xf32>
    %93 = arith.mulf %90, %92 : vector<1x128xf32>
    %c29 = arith.constant 29 : index
    %94 = memref.load %arg1[%c29] : memref<154xf32, #tpu.memory_space<smem>>
    %95 = vector.broadcast %94 : f32 to vector<1x128xf32>
    %96 = arith.addf %93, %95 : vector<1x128xf32>
    %c21 = arith.constant 21 : index
    %97 = memref.load %arg1[%c21] : memref<154xf32, #tpu.memory_space<smem>>
    %98 = vector.broadcast %97 : f32 to vector<1x128xf32>
    %99 = arith.mulf %90, %98 : vector<1x128xf32>
    %c30 = arith.constant 30 : index
    %100 = memref.load %arg1[%c30] : memref<154xf32, #tpu.memory_space<smem>>
    %101 = vector.broadcast %100 : f32 to vector<1x128xf32>
    %102 = arith.addf %99, %101 : vector<1x128xf32>
    %c22 = arith.constant 22 : index
    %103 = memref.load %arg1[%c22] : memref<154xf32, #tpu.memory_space<smem>>
    %104 = vector.broadcast %103 : f32 to vector<1x128xf32>
    %105 = arith.mulf %90, %104 : vector<1x128xf32>
    %c31 = arith.constant 31 : index
    %106 = memref.load %arg1[%c31] : memref<154xf32, #tpu.memory_space<smem>>
    %107 = vector.broadcast %106 : f32 to vector<1x128xf32>
    %108 = arith.subf %107, %105 : vector<1x128xf32>
    %cst_16 = arith.constant 0.000000e+00 : f32
    %109 = vector.broadcast %cst_16 : f32 to vector<1x128xf32>
    %110 = arith.maximumf %108, %109 : vector<1x128xf32>
    %c37 = arith.constant 37 : index
    %111 = memref.load %arg1[%c37] : memref<154xf32, #tpu.memory_space<smem>>
    %112 = vector.broadcast %111 : f32 to vector<1x128xf32>
    %113 = arith.mulf %110, %112 : vector<1x128xf32>
    %cst_17 = arith.constant 0.000000e+00 : f32
    %114 = vector.broadcast %cst_17 : f32 to vector<1x128xf32>
    %115 = arith.cmpf olt, %108, %114 : vector<1x128xf32>
    %cst_18 = arith.constant 0x7F800000 : f32
    %116 = vector.broadcast %cst_18 : f32 to vector<1x128xf32>
    %117 = arith.select %115, %116, %108 : vector<1x128xi1>, vector<1x128xf32>
    %c43 = arith.constant 43 : index
    %118 = memref.load %arg1[%c43] : memref<154xf32, #tpu.memory_space<smem>>
    %119 = vector.broadcast %118 : f32 to vector<1x128xf32>
    %120 = arith.addf %117, %119 : vector<1x128xf32>
    %c23 = arith.constant 23 : index
    %121 = memref.load %arg1[%c23] : memref<154xf32, #tpu.memory_space<smem>>
    %122 = vector.broadcast %121 : f32 to vector<1x128xf32>
    %123 = arith.mulf %90, %122 : vector<1x128xf32>
    %c32 = arith.constant 32 : index
    %124 = memref.load %arg1[%c32] : memref<154xf32, #tpu.memory_space<smem>>
    %125 = vector.broadcast %124 : f32 to vector<1x128xf32>
    %126 = arith.subf %125, %123 : vector<1x128xf32>
    %cst_19 = arith.constant 0.000000e+00 : f32
    %127 = vector.broadcast %cst_19 : f32 to vector<1x128xf32>
    %128 = arith.maximumf %126, %127 : vector<1x128xf32>
    %c38 = arith.constant 38 : index
    %129 = memref.load %arg1[%c38] : memref<154xf32, #tpu.memory_space<smem>>
    %130 = vector.broadcast %129 : f32 to vector<1x128xf32>
    %131 = arith.mulf %128, %130 : vector<1x128xf32>
    %cst_20 = arith.constant 0.000000e+00 : f32
    %132 = vector.broadcast %cst_20 : f32 to vector<1x128xf32>
    %133 = arith.cmpf olt, %126, %132 : vector<1x128xf32>
    %cst_21 = arith.constant 0x7F800000 : f32
    %134 = vector.broadcast %cst_21 : f32 to vector<1x128xf32>
    %135 = arith.select %133, %134, %126 : vector<1x128xi1>, vector<1x128xf32>
    %c44 = arith.constant 44 : index
    %136 = memref.load %arg1[%c44] : memref<154xf32, #tpu.memory_space<smem>>
    %137 = vector.broadcast %136 : f32 to vector<1x128xf32>
    %138 = arith.addf %135, %137 : vector<1x128xf32>
    %139 = arith.maximumf %113, %131 : vector<1x128xf32>
    %140 = arith.minimumf %120, %138 : vector<1x128xf32>
    %c24 = arith.constant 24 : index
    %141 = memref.load %arg1[%c24] : memref<154xf32, #tpu.memory_space<smem>>
    %142 = vector.broadcast %141 : f32 to vector<1x128xf32>
    %143 = arith.mulf %90, %142 : vector<1x128xf32>
    %c33 = arith.constant 33 : index
    %144 = memref.load %arg1[%c33] : memref<154xf32, #tpu.memory_space<smem>>
    %145 = vector.broadcast %144 : f32 to vector<1x128xf32>
    %146 = arith.subf %145, %143 : vector<1x128xf32>
    %cst_22 = arith.constant 0.000000e+00 : f32
    %147 = vector.broadcast %cst_22 : f32 to vector<1x128xf32>
    %148 = arith.maximumf %146, %147 : vector<1x128xf32>
    %c39 = arith.constant 39 : index
    %149 = memref.load %arg1[%c39] : memref<154xf32, #tpu.memory_space<smem>>
    %150 = vector.broadcast %149 : f32 to vector<1x128xf32>
    %151 = arith.mulf %148, %150 : vector<1x128xf32>
    %cst_23 = arith.constant 0.000000e+00 : f32
    %152 = vector.broadcast %cst_23 : f32 to vector<1x128xf32>
    %153 = arith.cmpf olt, %146, %152 : vector<1x128xf32>
    %cst_24 = arith.constant 0x7F800000 : f32
    %154 = vector.broadcast %cst_24 : f32 to vector<1x128xf32>
    %155 = arith.select %153, %154, %146 : vector<1x128xi1>, vector<1x128xf32>
    %c45 = arith.constant 45 : index
    %156 = memref.load %arg1[%c45] : memref<154xf32, #tpu.memory_space<smem>>
    %157 = vector.broadcast %156 : f32 to vector<1x128xf32>
    %158 = arith.addf %155, %157 : vector<1x128xf32>
    %159 = arith.maximumf %139, %151 : vector<1x128xf32>
    %160 = arith.minimumf %140, %158 : vector<1x128xf32>
    %c25 = arith.constant 25 : index
    %161 = memref.load %arg1[%c25] : memref<154xf32, #tpu.memory_space<smem>>
    %162 = vector.broadcast %161 : f32 to vector<1x128xf32>
    %163 = arith.mulf %90, %162 : vector<1x128xf32>
    %c34 = arith.constant 34 : index
    %164 = memref.load %arg1[%c34] : memref<154xf32, #tpu.memory_space<smem>>
    %165 = vector.broadcast %164 : f32 to vector<1x128xf32>
    %166 = arith.subf %165, %163 : vector<1x128xf32>
    %cst_25 = arith.constant 0.000000e+00 : f32
    %167 = vector.broadcast %cst_25 : f32 to vector<1x128xf32>
    %168 = arith.maximumf %166, %167 : vector<1x128xf32>
    %c40 = arith.constant 40 : index
    %169 = memref.load %arg1[%c40] : memref<154xf32, #tpu.memory_space<smem>>
    %170 = vector.broadcast %169 : f32 to vector<1x128xf32>
    %171 = arith.mulf %168, %170 : vector<1x128xf32>
    %cst_26 = arith.constant 0.000000e+00 : f32
    %172 = vector.broadcast %cst_26 : f32 to vector<1x128xf32>
    %173 = arith.cmpf olt, %166, %172 : vector<1x128xf32>
    %cst_27 = arith.constant 0x7F800000 : f32
    %174 = vector.broadcast %cst_27 : f32 to vector<1x128xf32>
    %175 = arith.select %173, %174, %166 : vector<1x128xi1>, vector<1x128xf32>
    %c46 = arith.constant 46 : index
    %176 = memref.load %arg1[%c46] : memref<154xf32, #tpu.memory_space<smem>>
    %177 = vector.broadcast %176 : f32 to vector<1x128xf32>
    %178 = arith.addf %175, %177 : vector<1x128xf32>
    %179 = arith.maximumf %159, %171 : vector<1x128xf32>
    %180 = arith.minimumf %160, %178 : vector<1x128xf32>
    %c26 = arith.constant 26 : index
    %181 = memref.load %arg1[%c26] : memref<154xf32, #tpu.memory_space<smem>>
    %182 = vector.broadcast %181 : f32 to vector<1x128xf32>
    %183 = arith.mulf %90, %182 : vector<1x128xf32>
    %c35 = arith.constant 35 : index
    %184 = memref.load %arg1[%c35] : memref<154xf32, #tpu.memory_space<smem>>
    %185 = vector.broadcast %184 : f32 to vector<1x128xf32>
    %186 = arith.subf %185, %183 : vector<1x128xf32>
    %cst_28 = arith.constant 0.000000e+00 : f32
    %187 = vector.broadcast %cst_28 : f32 to vector<1x128xf32>
    %188 = arith.maximumf %186, %187 : vector<1x128xf32>
    %c41 = arith.constant 41 : index
    %189 = memref.load %arg1[%c41] : memref<154xf32, #tpu.memory_space<smem>>
    %190 = vector.broadcast %189 : f32 to vector<1x128xf32>
    %191 = arith.mulf %188, %190 : vector<1x128xf32>
    %cst_29 = arith.constant 0.000000e+00 : f32
    %192 = vector.broadcast %cst_29 : f32 to vector<1x128xf32>
    %193 = arith.cmpf olt, %186, %192 : vector<1x128xf32>
    %cst_30 = arith.constant 0x7F800000 : f32
    %194 = vector.broadcast %cst_30 : f32 to vector<1x128xf32>
    %195 = arith.select %193, %194, %186 : vector<1x128xi1>, vector<1x128xf32>
    %c47 = arith.constant 47 : index
    %196 = memref.load %arg1[%c47] : memref<154xf32, #tpu.memory_space<smem>>
    %197 = vector.broadcast %196 : f32 to vector<1x128xf32>
    %198 = arith.addf %195, %197 : vector<1x128xf32>
    %199 = arith.maximumf %179, %191 : vector<1x128xf32>
    %200 = arith.minimumf %180, %198 : vector<1x128xf32>
    %c27 = arith.constant 27 : index
    %201 = memref.load %arg1[%c27] : memref<154xf32, #tpu.memory_space<smem>>
    %202 = vector.broadcast %201 : f32 to vector<1x128xf32>
    %203 = arith.mulf %90, %202 : vector<1x128xf32>
    %c36 = arith.constant 36 : index
    %204 = memref.load %arg1[%c36] : memref<154xf32, #tpu.memory_space<smem>>
    %205 = vector.broadcast %204 : f32 to vector<1x128xf32>
    %206 = arith.subf %205, %203 : vector<1x128xf32>
    %cst_31 = arith.constant 0.000000e+00 : f32
    %207 = vector.broadcast %cst_31 : f32 to vector<1x128xf32>
    %208 = arith.maximumf %206, %207 : vector<1x128xf32>
    %c42 = arith.constant 42 : index
    %209 = memref.load %arg1[%c42] : memref<154xf32, #tpu.memory_space<smem>>
    %210 = vector.broadcast %209 : f32 to vector<1x128xf32>
    %211 = arith.mulf %208, %210 : vector<1x128xf32>
    %cst_32 = arith.constant 0.000000e+00 : f32
    %212 = vector.broadcast %cst_32 : f32 to vector<1x128xf32>
    %213 = arith.cmpf olt, %206, %212 : vector<1x128xf32>
    %cst_33 = arith.constant 0x7F800000 : f32
    %214 = vector.broadcast %cst_33 : f32 to vector<1x128xf32>
    %215 = arith.select %213, %214, %206 : vector<1x128xi1>, vector<1x128xf32>
    %c48 = arith.constant 48 : index
    %216 = memref.load %arg1[%c48] : memref<154xf32, #tpu.memory_space<smem>>
    %217 = vector.broadcast %216 : f32 to vector<1x128xf32>
    %218 = arith.addf %215, %217 : vector<1x128xf32>
    %219 = arith.maximumf %199, %211 : vector<1x128xf32>
    %220 = arith.minimumf %200, %218 : vector<1x128xf32>
    %c28 = arith.constant 28 : index
    %221 = memref.load %arg1[%c28] : memref<154xf32, #tpu.memory_space<smem>>
    %222 = vector.broadcast %221 : f32 to vector<1x128xf32>
    %223 = arith.mulf %90, %222 : vector<1x128xf32>
    %224 = arith.addf %43, %223 : vector<1x128xf32>
    %cst_34 = arith.constant 5.000000e-01 : f32
    %225 = vector.broadcast %cst_34 : f32 to vector<1x128xf32>
    %226 = arith.mulf %225, %224 : vector<1x128xf32>
    %227 = math.tanh %226 : vector<1x128xf32>
    %cst_35 = arith.constant 5.000000e-01 : f32
    %228 = vector.broadcast %cst_35 : f32 to vector<1x128xf32>
    %229 = arith.mulf %228, %227 : vector<1x128xf32>
    %cst_36 = arith.constant 5.000000e-01 : f32
    %230 = vector.broadcast %cst_36 : f32 to vector<1x128xf32>
    %231 = arith.addf %229, %230 : vector<1x128xf32>
    %232 = arith.subf %220, %219 : vector<1x128xf32>
    %233 = arith.mulf %231, %232 : vector<1x128xf32>
    %234 = arith.addf %233, %219 : vector<1x128xf32>
    %c49 = arith.constant 49 : index
    %235 = memref.load %arg1[%c49] : memref<154xf32, #tpu.memory_space<smem>>
    %236 = vector.broadcast %235 : f32 to vector<1x128xf32>
    %237 = arith.mulf %234, %236 : vector<1x128xf32>
    %238 = arith.addf %96, %237 : vector<1x128xf32>
    %c50 = arith.constant 50 : index
    %239 = memref.load %arg1[%c50] : memref<154xf32, #tpu.memory_space<smem>>
    %240 = vector.broadcast %239 : f32 to vector<1x128xf32>
    %241 = arith.mulf %234, %240 : vector<1x128xf32>
    %242 = arith.addf %102, %241 : vector<1x128xf32>
    %c51 = arith.constant 51 : index
    %243 = memref.load %arg1[%c51] : memref<154xf32, #tpu.memory_space<smem>>
    %244 = vector.broadcast %243 : f32 to vector<1x128xf32>
    %245 = arith.mulf %238, %244 : vector<1x128xf32>
    %c61 = arith.constant 61 : index
    %246 = memref.load %arg1[%c61] : memref<154xf32, #tpu.memory_space<smem>>
    %247 = vector.broadcast %246 : f32 to vector<1x128xf32>
    %248 = arith.mulf %242, %247 : vector<1x128xf32>
    %249 = arith.addf %245, %248 : vector<1x128xf32>
    %c71 = arith.constant 71 : index
    %250 = memref.load %arg1[%c71] : memref<154xf32, #tpu.memory_space<smem>>
    %251 = vector.broadcast %250 : f32 to vector<1x128xf32>
    %252 = arith.addf %249, %251 : vector<1x128xf32>
    %c52 = arith.constant 52 : index
    %253 = memref.load %arg1[%c52] : memref<154xf32, #tpu.memory_space<smem>>
    %254 = vector.broadcast %253 : f32 to vector<1x128xf32>
    %255 = arith.mulf %238, %254 : vector<1x128xf32>
    %c62 = arith.constant 62 : index
    %256 = memref.load %arg1[%c62] : memref<154xf32, #tpu.memory_space<smem>>
    %257 = vector.broadcast %256 : f32 to vector<1x128xf32>
    %258 = arith.mulf %242, %257 : vector<1x128xf32>
    %259 = arith.addf %255, %258 : vector<1x128xf32>
    %c72 = arith.constant 72 : index
    %260 = memref.load %arg1[%c72] : memref<154xf32, #tpu.memory_space<smem>>
    %261 = vector.broadcast %260 : f32 to vector<1x128xf32>
    %262 = arith.addf %259, %261 : vector<1x128xf32>
    %c53 = arith.constant 53 : index
    %263 = memref.load %arg1[%c53] : memref<154xf32, #tpu.memory_space<smem>>
    %264 = vector.broadcast %263 : f32 to vector<1x128xf32>
    %265 = arith.mulf %238, %264 : vector<1x128xf32>
    %c63 = arith.constant 63 : index
    %266 = memref.load %arg1[%c63] : memref<154xf32, #tpu.memory_space<smem>>
    %267 = vector.broadcast %266 : f32 to vector<1x128xf32>
    %268 = arith.mulf %242, %267 : vector<1x128xf32>
    %269 = arith.addf %265, %268 : vector<1x128xf32>
    %c73 = arith.constant 73 : index
    %270 = memref.load %arg1[%c73] : memref<154xf32, #tpu.memory_space<smem>>
    %271 = vector.broadcast %270 : f32 to vector<1x128xf32>
    %272 = arith.addf %269, %271 : vector<1x128xf32>
    %c54 = arith.constant 54 : index
    %273 = memref.load %arg1[%c54] : memref<154xf32, #tpu.memory_space<smem>>
    %274 = vector.broadcast %273 : f32 to vector<1x128xf32>
    %275 = arith.mulf %238, %274 : vector<1x128xf32>
    %c64 = arith.constant 64 : index
    %276 = memref.load %arg1[%c64] : memref<154xf32, #tpu.memory_space<smem>>
    %277 = vector.broadcast %276 : f32 to vector<1x128xf32>
    %278 = arith.mulf %242, %277 : vector<1x128xf32>
    %279 = arith.addf %275, %278 : vector<1x128xf32>
    %c74 = arith.constant 74 : index
    %280 = memref.load %arg1[%c74] : memref<154xf32, #tpu.memory_space<smem>>
    %281 = vector.broadcast %280 : f32 to vector<1x128xf32>
    %282 = arith.subf %281, %279 : vector<1x128xf32>
    %cst_37 = arith.constant 0.000000e+00 : f32
    %283 = vector.broadcast %cst_37 : f32 to vector<1x128xf32>
    %284 = arith.maximumf %282, %283 : vector<1x128xf32>
    %c80 = arith.constant 80 : index
    %285 = memref.load %arg1[%c80] : memref<154xf32, #tpu.memory_space<smem>>
    %286 = vector.broadcast %285 : f32 to vector<1x128xf32>
    %287 = arith.mulf %284, %286 : vector<1x128xf32>
    %cst_38 = arith.constant 0.000000e+00 : f32
    %288 = vector.broadcast %cst_38 : f32 to vector<1x128xf32>
    %289 = arith.cmpf olt, %282, %288 : vector<1x128xf32>
    %cst_39 = arith.constant 0x7F800000 : f32
    %290 = vector.broadcast %cst_39 : f32 to vector<1x128xf32>
    %291 = arith.select %289, %290, %282 : vector<1x128xi1>, vector<1x128xf32>
    %c86 = arith.constant 86 : index
    %292 = memref.load %arg1[%c86] : memref<154xf32, #tpu.memory_space<smem>>
    %293 = vector.broadcast %292 : f32 to vector<1x128xf32>
    %294 = arith.addf %291, %293 : vector<1x128xf32>
    %c55 = arith.constant 55 : index
    %295 = memref.load %arg1[%c55] : memref<154xf32, #tpu.memory_space<smem>>
    %296 = vector.broadcast %295 : f32 to vector<1x128xf32>
    %297 = arith.mulf %238, %296 : vector<1x128xf32>
    %c65 = arith.constant 65 : index
    %298 = memref.load %arg1[%c65] : memref<154xf32, #tpu.memory_space<smem>>
    %299 = vector.broadcast %298 : f32 to vector<1x128xf32>
    %300 = arith.mulf %242, %299 : vector<1x128xf32>
    %301 = arith.addf %297, %300 : vector<1x128xf32>
    %c75 = arith.constant 75 : index
    %302 = memref.load %arg1[%c75] : memref<154xf32, #tpu.memory_space<smem>>
    %303 = vector.broadcast %302 : f32 to vector<1x128xf32>
    %304 = arith.subf %303, %301 : vector<1x128xf32>
    %cst_40 = arith.constant 0.000000e+00 : f32
    %305 = vector.broadcast %cst_40 : f32 to vector<1x128xf32>
    %306 = arith.maximumf %304, %305 : vector<1x128xf32>
    %c81 = arith.constant 81 : index
    %307 = memref.load %arg1[%c81] : memref<154xf32, #tpu.memory_space<smem>>
    %308 = vector.broadcast %307 : f32 to vector<1x128xf32>
    %309 = arith.mulf %306, %308 : vector<1x128xf32>
    %cst_41 = arith.constant 0.000000e+00 : f32
    %310 = vector.broadcast %cst_41 : f32 to vector<1x128xf32>
    %311 = arith.cmpf olt, %304, %310 : vector<1x128xf32>
    %cst_42 = arith.constant 0x7F800000 : f32
    %312 = vector.broadcast %cst_42 : f32 to vector<1x128xf32>
    %313 = arith.select %311, %312, %304 : vector<1x128xi1>, vector<1x128xf32>
    %c87 = arith.constant 87 : index
    %314 = memref.load %arg1[%c87] : memref<154xf32, #tpu.memory_space<smem>>
    %315 = vector.broadcast %314 : f32 to vector<1x128xf32>
    %316 = arith.addf %313, %315 : vector<1x128xf32>
    %317 = arith.maximumf %287, %309 : vector<1x128xf32>
    %318 = arith.minimumf %294, %316 : vector<1x128xf32>
    %c56 = arith.constant 56 : index
    %319 = memref.load %arg1[%c56] : memref<154xf32, #tpu.memory_space<smem>>
    %320 = vector.broadcast %319 : f32 to vector<1x128xf32>
    %321 = arith.mulf %238, %320 : vector<1x128xf32>
    %c66 = arith.constant 66 : index
    %322 = memref.load %arg1[%c66] : memref<154xf32, #tpu.memory_space<smem>>
    %323 = vector.broadcast %322 : f32 to vector<1x128xf32>
    %324 = arith.mulf %242, %323 : vector<1x128xf32>
    %325 = arith.addf %321, %324 : vector<1x128xf32>
    %c76 = arith.constant 76 : index
    %326 = memref.load %arg1[%c76] : memref<154xf32, #tpu.memory_space<smem>>
    %327 = vector.broadcast %326 : f32 to vector<1x128xf32>
    %328 = arith.subf %327, %325 : vector<1x128xf32>
    %cst_43 = arith.constant 0.000000e+00 : f32
    %329 = vector.broadcast %cst_43 : f32 to vector<1x128xf32>
    %330 = arith.maximumf %328, %329 : vector<1x128xf32>
    %c82 = arith.constant 82 : index
    %331 = memref.load %arg1[%c82] : memref<154xf32, #tpu.memory_space<smem>>
    %332 = vector.broadcast %331 : f32 to vector<1x128xf32>
    %333 = arith.mulf %330, %332 : vector<1x128xf32>
    %cst_44 = arith.constant 0.000000e+00 : f32
    %334 = vector.broadcast %cst_44 : f32 to vector<1x128xf32>
    %335 = arith.cmpf olt, %328, %334 : vector<1x128xf32>
    %cst_45 = arith.constant 0x7F800000 : f32
    %336 = vector.broadcast %cst_45 : f32 to vector<1x128xf32>
    %337 = arith.select %335, %336, %328 : vector<1x128xi1>, vector<1x128xf32>
    %c88 = arith.constant 88 : index
    %338 = memref.load %arg1[%c88] : memref<154xf32, #tpu.memory_space<smem>>
    %339 = vector.broadcast %338 : f32 to vector<1x128xf32>
    %340 = arith.addf %337, %339 : vector<1x128xf32>
    %341 = arith.maximumf %317, %333 : vector<1x128xf32>
    %342 = arith.minimumf %318, %340 : vector<1x128xf32>
    %c57 = arith.constant 57 : index
    %343 = memref.load %arg1[%c57] : memref<154xf32, #tpu.memory_space<smem>>
    %344 = vector.broadcast %343 : f32 to vector<1x128xf32>
    %345 = arith.mulf %238, %344 : vector<1x128xf32>
    %c67 = arith.constant 67 : index
    %346 = memref.load %arg1[%c67] : memref<154xf32, #tpu.memory_space<smem>>
    %347 = vector.broadcast %346 : f32 to vector<1x128xf32>
    %348 = arith.mulf %242, %347 : vector<1x128xf32>
    %349 = arith.addf %345, %348 : vector<1x128xf32>
    %c77 = arith.constant 77 : index
    %350 = memref.load %arg1[%c77] : memref<154xf32, #tpu.memory_space<smem>>
    %351 = vector.broadcast %350 : f32 to vector<1x128xf32>
    %352 = arith.subf %351, %349 : vector<1x128xf32>
    %cst_46 = arith.constant 0.000000e+00 : f32
    %353 = vector.broadcast %cst_46 : f32 to vector<1x128xf32>
    %354 = arith.maximumf %352, %353 : vector<1x128xf32>
    %c83 = arith.constant 83 : index
    %355 = memref.load %arg1[%c83] : memref<154xf32, #tpu.memory_space<smem>>
    %356 = vector.broadcast %355 : f32 to vector<1x128xf32>
    %357 = arith.mulf %354, %356 : vector<1x128xf32>
    %cst_47 = arith.constant 0.000000e+00 : f32
    %358 = vector.broadcast %cst_47 : f32 to vector<1x128xf32>
    %359 = arith.cmpf olt, %352, %358 : vector<1x128xf32>
    %cst_48 = arith.constant 0x7F800000 : f32
    %360 = vector.broadcast %cst_48 : f32 to vector<1x128xf32>
    %361 = arith.select %359, %360, %352 : vector<1x128xi1>, vector<1x128xf32>
    %c89 = arith.constant 89 : index
    %362 = memref.load %arg1[%c89] : memref<154xf32, #tpu.memory_space<smem>>
    %363 = vector.broadcast %362 : f32 to vector<1x128xf32>
    %364 = arith.addf %361, %363 : vector<1x128xf32>
    %365 = arith.maximumf %341, %357 : vector<1x128xf32>
    %366 = arith.minimumf %342, %364 : vector<1x128xf32>
    %c58 = arith.constant 58 : index
    %367 = memref.load %arg1[%c58] : memref<154xf32, #tpu.memory_space<smem>>
    %368 = vector.broadcast %367 : f32 to vector<1x128xf32>
    %369 = arith.mulf %238, %368 : vector<1x128xf32>
    %c68 = arith.constant 68 : index
    %370 = memref.load %arg1[%c68] : memref<154xf32, #tpu.memory_space<smem>>
    %371 = vector.broadcast %370 : f32 to vector<1x128xf32>
    %372 = arith.mulf %242, %371 : vector<1x128xf32>
    %373 = arith.addf %369, %372 : vector<1x128xf32>
    %c78 = arith.constant 78 : index
    %374 = memref.load %arg1[%c78] : memref<154xf32, #tpu.memory_space<smem>>
    %375 = vector.broadcast %374 : f32 to vector<1x128xf32>
    %376 = arith.subf %375, %373 : vector<1x128xf32>
    %cst_49 = arith.constant 0.000000e+00 : f32
    %377 = vector.broadcast %cst_49 : f32 to vector<1x128xf32>
    %378 = arith.maximumf %376, %377 : vector<1x128xf32>
    %c84 = arith.constant 84 : index
    %379 = memref.load %arg1[%c84] : memref<154xf32, #tpu.memory_space<smem>>
    %380 = vector.broadcast %379 : f32 to vector<1x128xf32>
    %381 = arith.mulf %378, %380 : vector<1x128xf32>
    %cst_50 = arith.constant 0.000000e+00 : f32
    %382 = vector.broadcast %cst_50 : f32 to vector<1x128xf32>
    %383 = arith.cmpf olt, %376, %382 : vector<1x128xf32>
    %cst_51 = arith.constant 0x7F800000 : f32
    %384 = vector.broadcast %cst_51 : f32 to vector<1x128xf32>
    %385 = arith.select %383, %384, %376 : vector<1x128xi1>, vector<1x128xf32>
    %c90 = arith.constant 90 : index
    %386 = memref.load %arg1[%c90] : memref<154xf32, #tpu.memory_space<smem>>
    %387 = vector.broadcast %386 : f32 to vector<1x128xf32>
    %388 = arith.addf %385, %387 : vector<1x128xf32>
    %389 = arith.maximumf %365, %381 : vector<1x128xf32>
    %390 = arith.minimumf %366, %388 : vector<1x128xf32>
    %c59 = arith.constant 59 : index
    %391 = memref.load %arg1[%c59] : memref<154xf32, #tpu.memory_space<smem>>
    %392 = vector.broadcast %391 : f32 to vector<1x128xf32>
    %393 = arith.mulf %238, %392 : vector<1x128xf32>
    %c69 = arith.constant 69 : index
    %394 = memref.load %arg1[%c69] : memref<154xf32, #tpu.memory_space<smem>>
    %395 = vector.broadcast %394 : f32 to vector<1x128xf32>
    %396 = arith.mulf %242, %395 : vector<1x128xf32>
    %397 = arith.addf %393, %396 : vector<1x128xf32>
    %c79 = arith.constant 79 : index
    %398 = memref.load %arg1[%c79] : memref<154xf32, #tpu.memory_space<smem>>
    %399 = vector.broadcast %398 : f32 to vector<1x128xf32>
    %400 = arith.subf %399, %397 : vector<1x128xf32>
    %cst_52 = arith.constant 0.000000e+00 : f32
    %401 = vector.broadcast %cst_52 : f32 to vector<1x128xf32>
    %402 = arith.maximumf %400, %401 : vector<1x128xf32>
    %c85 = arith.constant 85 : index
    %403 = memref.load %arg1[%c85] : memref<154xf32, #tpu.memory_space<smem>>
    %404 = vector.broadcast %403 : f32 to vector<1x128xf32>
    %405 = arith.mulf %402, %404 : vector<1x128xf32>
    %cst_53 = arith.constant 0.000000e+00 : f32
    %406 = vector.broadcast %cst_53 : f32 to vector<1x128xf32>
    %407 = arith.cmpf olt, %400, %406 : vector<1x128xf32>
    %cst_54 = arith.constant 0x7F800000 : f32
    %408 = vector.broadcast %cst_54 : f32 to vector<1x128xf32>
    %409 = arith.select %407, %408, %400 : vector<1x128xi1>, vector<1x128xf32>
    %c91 = arith.constant 91 : index
    %410 = memref.load %arg1[%c91] : memref<154xf32, #tpu.memory_space<smem>>
    %411 = vector.broadcast %410 : f32 to vector<1x128xf32>
    %412 = arith.addf %409, %411 : vector<1x128xf32>
    %413 = arith.maximumf %389, %405 : vector<1x128xf32>
    %414 = arith.minimumf %390, %412 : vector<1x128xf32>
    %c60 = arith.constant 60 : index
    %415 = memref.load %arg1[%c60] : memref<154xf32, #tpu.memory_space<smem>>
    %416 = vector.broadcast %415 : f32 to vector<1x128xf32>
    %417 = arith.mulf %238, %416 : vector<1x128xf32>
    %c70 = arith.constant 70 : index
    %418 = memref.load %arg1[%c70] : memref<154xf32, #tpu.memory_space<smem>>
    %419 = vector.broadcast %418 : f32 to vector<1x128xf32>
    %420 = arith.mulf %242, %419 : vector<1x128xf32>
    %421 = arith.addf %417, %420 : vector<1x128xf32>
    %422 = arith.addf %61, %421 : vector<1x128xf32>
    %cst_55 = arith.constant 5.000000e-01 : f32
    %423 = vector.broadcast %cst_55 : f32 to vector<1x128xf32>
    %424 = arith.mulf %423, %422 : vector<1x128xf32>
    %425 = math.tanh %424 : vector<1x128xf32>
    %cst_56 = arith.constant 5.000000e-01 : f32
    %426 = vector.broadcast %cst_56 : f32 to vector<1x128xf32>
    %427 = arith.mulf %426, %425 : vector<1x128xf32>
    %cst_57 = arith.constant 5.000000e-01 : f32
    %428 = vector.broadcast %cst_57 : f32 to vector<1x128xf32>
    %429 = arith.addf %427, %428 : vector<1x128xf32>
    %430 = arith.subf %414, %413 : vector<1x128xf32>
    %431 = arith.mulf %429, %430 : vector<1x128xf32>
    %432 = arith.addf %431, %413 : vector<1x128xf32>
    %c92 = arith.constant 92 : index
    %433 = memref.load %arg1[%c92] : memref<154xf32, #tpu.memory_space<smem>>
    %434 = vector.broadcast %433 : f32 to vector<1x128xf32>
    %435 = arith.mulf %432, %434 : vector<1x128xf32>
    %436 = arith.addf %252, %435 : vector<1x128xf32>
    %c93 = arith.constant 93 : index
    %437 = memref.load %arg1[%c93] : memref<154xf32, #tpu.memory_space<smem>>
    %438 = vector.broadcast %437 : f32 to vector<1x128xf32>
    %439 = arith.mulf %432, %438 : vector<1x128xf32>
    %440 = arith.addf %262, %439 : vector<1x128xf32>
    %c94 = arith.constant 94 : index
    %441 = memref.load %arg1[%c94] : memref<154xf32, #tpu.memory_space<smem>>
    %442 = vector.broadcast %441 : f32 to vector<1x128xf32>
    %443 = arith.mulf %432, %442 : vector<1x128xf32>
    %444 = arith.addf %272, %443 : vector<1x128xf32>
    %c95 = arith.constant 95 : index
    %445 = memref.load %arg1[%c95] : memref<154xf32, #tpu.memory_space<smem>>
    %446 = vector.broadcast %445 : f32 to vector<1x128xf32>
    %447 = arith.mulf %436, %446 : vector<1x128xf32>
    %c106 = arith.constant 106 : index
    %448 = memref.load %arg1[%c106] : memref<154xf32, #tpu.memory_space<smem>>
    %449 = vector.broadcast %448 : f32 to vector<1x128xf32>
    %450 = arith.mulf %440, %449 : vector<1x128xf32>
    %451 = arith.addf %447, %450 : vector<1x128xf32>
    %c117 = arith.constant 117 : index
    %452 = memref.load %arg1[%c117] : memref<154xf32, #tpu.memory_space<smem>>
    %453 = vector.broadcast %452 : f32 to vector<1x128xf32>
    %454 = arith.mulf %444, %453 : vector<1x128xf32>
    %455 = arith.addf %451, %454 : vector<1x128xf32>
    %c128 = arith.constant 128 : index
    %456 = memref.load %arg1[%c128] : memref<154xf32, #tpu.memory_space<smem>>
    %457 = vector.broadcast %456 : f32 to vector<1x128xf32>
    %458 = arith.addf %455, %457 : vector<1x128xf32>
    %c96 = arith.constant 96 : index
    %459 = memref.load %arg1[%c96] : memref<154xf32, #tpu.memory_space<smem>>
    %460 = vector.broadcast %459 : f32 to vector<1x128xf32>
    %461 = arith.mulf %436, %460 : vector<1x128xf32>
    %c107 = arith.constant 107 : index
    %462 = memref.load %arg1[%c107] : memref<154xf32, #tpu.memory_space<smem>>
    %463 = vector.broadcast %462 : f32 to vector<1x128xf32>
    %464 = arith.mulf %440, %463 : vector<1x128xf32>
    %465 = arith.addf %461, %464 : vector<1x128xf32>
    %c118 = arith.constant 118 : index
    %466 = memref.load %arg1[%c118] : memref<154xf32, #tpu.memory_space<smem>>
    %467 = vector.broadcast %466 : f32 to vector<1x128xf32>
    %468 = arith.mulf %444, %467 : vector<1x128xf32>
    %469 = arith.addf %465, %468 : vector<1x128xf32>
    %c129 = arith.constant 129 : index
    %470 = memref.load %arg1[%c129] : memref<154xf32, #tpu.memory_space<smem>>
    %471 = vector.broadcast %470 : f32 to vector<1x128xf32>
    %472 = arith.addf %469, %471 : vector<1x128xf32>
    %c97 = arith.constant 97 : index
    %473 = memref.load %arg1[%c97] : memref<154xf32, #tpu.memory_space<smem>>
    %474 = vector.broadcast %473 : f32 to vector<1x128xf32>
    %475 = arith.mulf %436, %474 : vector<1x128xf32>
    %c108 = arith.constant 108 : index
    %476 = memref.load %arg1[%c108] : memref<154xf32, #tpu.memory_space<smem>>
    %477 = vector.broadcast %476 : f32 to vector<1x128xf32>
    %478 = arith.mulf %440, %477 : vector<1x128xf32>
    %479 = arith.addf %475, %478 : vector<1x128xf32>
    %c119 = arith.constant 119 : index
    %480 = memref.load %arg1[%c119] : memref<154xf32, #tpu.memory_space<smem>>
    %481 = vector.broadcast %480 : f32 to vector<1x128xf32>
    %482 = arith.mulf %444, %481 : vector<1x128xf32>
    %483 = arith.addf %479, %482 : vector<1x128xf32>
    %c130 = arith.constant 130 : index
    %484 = memref.load %arg1[%c130] : memref<154xf32, #tpu.memory_space<smem>>
    %485 = vector.broadcast %484 : f32 to vector<1x128xf32>
    %486 = arith.addf %483, %485 : vector<1x128xf32>
    %c98 = arith.constant 98 : index
    %487 = memref.load %arg1[%c98] : memref<154xf32, #tpu.memory_space<smem>>
    %488 = vector.broadcast %487 : f32 to vector<1x128xf32>
    %489 = arith.mulf %436, %488 : vector<1x128xf32>
    %c109 = arith.constant 109 : index
    %490 = memref.load %arg1[%c109] : memref<154xf32, #tpu.memory_space<smem>>
    %491 = vector.broadcast %490 : f32 to vector<1x128xf32>
    %492 = arith.mulf %440, %491 : vector<1x128xf32>
    %493 = arith.addf %489, %492 : vector<1x128xf32>
    %c120 = arith.constant 120 : index
    %494 = memref.load %arg1[%c120] : memref<154xf32, #tpu.memory_space<smem>>
    %495 = vector.broadcast %494 : f32 to vector<1x128xf32>
    %496 = arith.mulf %444, %495 : vector<1x128xf32>
    %497 = arith.addf %493, %496 : vector<1x128xf32>
    %c131 = arith.constant 131 : index
    %498 = memref.load %arg1[%c131] : memref<154xf32, #tpu.memory_space<smem>>
    %499 = vector.broadcast %498 : f32 to vector<1x128xf32>
    %500 = arith.addf %497, %499 : vector<1x128xf32>
    %c99 = arith.constant 99 : index
    %501 = memref.load %arg1[%c99] : memref<154xf32, #tpu.memory_space<smem>>
    %502 = vector.broadcast %501 : f32 to vector<1x128xf32>
    %503 = arith.mulf %436, %502 : vector<1x128xf32>
    %c110 = arith.constant 110 : index
    %504 = memref.load %arg1[%c110] : memref<154xf32, #tpu.memory_space<smem>>
    %505 = vector.broadcast %504 : f32 to vector<1x128xf32>
    %506 = arith.mulf %440, %505 : vector<1x128xf32>
    %507 = arith.addf %503, %506 : vector<1x128xf32>
    %c121 = arith.constant 121 : index
    %508 = memref.load %arg1[%c121] : memref<154xf32, #tpu.memory_space<smem>>
    %509 = vector.broadcast %508 : f32 to vector<1x128xf32>
    %510 = arith.mulf %444, %509 : vector<1x128xf32>
    %511 = arith.addf %507, %510 : vector<1x128xf32>
    %c132 = arith.constant 132 : index
    %512 = memref.load %arg1[%c132] : memref<154xf32, #tpu.memory_space<smem>>
    %513 = vector.broadcast %512 : f32 to vector<1x128xf32>
    %514 = arith.subf %513, %511 : vector<1x128xf32>
    %cst_58 = arith.constant 0.000000e+00 : f32
    %515 = vector.broadcast %cst_58 : f32 to vector<1x128xf32>
    %516 = arith.maximumf %514, %515 : vector<1x128xf32>
    %c138 = arith.constant 138 : index
    %517 = memref.load %arg1[%c138] : memref<154xf32, #tpu.memory_space<smem>>
    %518 = vector.broadcast %517 : f32 to vector<1x128xf32>
    %519 = arith.mulf %516, %518 : vector<1x128xf32>
    %cst_59 = arith.constant 0.000000e+00 : f32
    %520 = vector.broadcast %cst_59 : f32 to vector<1x128xf32>
    %521 = arith.cmpf olt, %514, %520 : vector<1x128xf32>
    %cst_60 = arith.constant 0x7F800000 : f32
    %522 = vector.broadcast %cst_60 : f32 to vector<1x128xf32>
    %523 = arith.select %521, %522, %514 : vector<1x128xi1>, vector<1x128xf32>
    %c144 = arith.constant 144 : index
    %524 = memref.load %arg1[%c144] : memref<154xf32, #tpu.memory_space<smem>>
    %525 = vector.broadcast %524 : f32 to vector<1x128xf32>
    %526 = arith.addf %523, %525 : vector<1x128xf32>
    %c100 = arith.constant 100 : index
    %527 = memref.load %arg1[%c100] : memref<154xf32, #tpu.memory_space<smem>>
    %528 = vector.broadcast %527 : f32 to vector<1x128xf32>
    %529 = arith.mulf %436, %528 : vector<1x128xf32>
    %c111 = arith.constant 111 : index
    %530 = memref.load %arg1[%c111] : memref<154xf32, #tpu.memory_space<smem>>
    %531 = vector.broadcast %530 : f32 to vector<1x128xf32>
    %532 = arith.mulf %440, %531 : vector<1x128xf32>
    %533 = arith.addf %529, %532 : vector<1x128xf32>
    %c122 = arith.constant 122 : index
    %534 = memref.load %arg1[%c122] : memref<154xf32, #tpu.memory_space<smem>>
    %535 = vector.broadcast %534 : f32 to vector<1x128xf32>
    %536 = arith.mulf %444, %535 : vector<1x128xf32>
    %537 = arith.addf %533, %536 : vector<1x128xf32>
    %c133 = arith.constant 133 : index
    %538 = memref.load %arg1[%c133] : memref<154xf32, #tpu.memory_space<smem>>
    %539 = vector.broadcast %538 : f32 to vector<1x128xf32>
    %540 = arith.subf %539, %537 : vector<1x128xf32>
    %cst_61 = arith.constant 0.000000e+00 : f32
    %541 = vector.broadcast %cst_61 : f32 to vector<1x128xf32>
    %542 = arith.maximumf %540, %541 : vector<1x128xf32>
    %c139 = arith.constant 139 : index
    %543 = memref.load %arg1[%c139] : memref<154xf32, #tpu.memory_space<smem>>
    %544 = vector.broadcast %543 : f32 to vector<1x128xf32>
    %545 = arith.mulf %542, %544 : vector<1x128xf32>
    %cst_62 = arith.constant 0.000000e+00 : f32
    %546 = vector.broadcast %cst_62 : f32 to vector<1x128xf32>
    %547 = arith.cmpf olt, %540, %546 : vector<1x128xf32>
    %cst_63 = arith.constant 0x7F800000 : f32
    %548 = vector.broadcast %cst_63 : f32 to vector<1x128xf32>
    %549 = arith.select %547, %548, %540 : vector<1x128xi1>, vector<1x128xf32>
    %c145 = arith.constant 145 : index
    %550 = memref.load %arg1[%c145] : memref<154xf32, #tpu.memory_space<smem>>
    %551 = vector.broadcast %550 : f32 to vector<1x128xf32>
    %552 = arith.addf %549, %551 : vector<1x128xf32>
    %553 = arith.maximumf %519, %545 : vector<1x128xf32>
    %554 = arith.minimumf %526, %552 : vector<1x128xf32>
    %c101 = arith.constant 101 : index
    %555 = memref.load %arg1[%c101] : memref<154xf32, #tpu.memory_space<smem>>
    %556 = vector.broadcast %555 : f32 to vector<1x128xf32>
    %557 = arith.mulf %436, %556 : vector<1x128xf32>
    %c112 = arith.constant 112 : index
    %558 = memref.load %arg1[%c112] : memref<154xf32, #tpu.memory_space<smem>>
    %559 = vector.broadcast %558 : f32 to vector<1x128xf32>
    %560 = arith.mulf %440, %559 : vector<1x128xf32>
    %561 = arith.addf %557, %560 : vector<1x128xf32>
    %c123 = arith.constant 123 : index
    %562 = memref.load %arg1[%c123] : memref<154xf32, #tpu.memory_space<smem>>
    %563 = vector.broadcast %562 : f32 to vector<1x128xf32>
    %564 = arith.mulf %444, %563 : vector<1x128xf32>
    %565 = arith.addf %561, %564 : vector<1x128xf32>
    %c134 = arith.constant 134 : index
    %566 = memref.load %arg1[%c134] : memref<154xf32, #tpu.memory_space<smem>>
    %567 = vector.broadcast %566 : f32 to vector<1x128xf32>
    %568 = arith.subf %567, %565 : vector<1x128xf32>
    %cst_64 = arith.constant 0.000000e+00 : f32
    %569 = vector.broadcast %cst_64 : f32 to vector<1x128xf32>
    %570 = arith.maximumf %568, %569 : vector<1x128xf32>
    %c140 = arith.constant 140 : index
    %571 = memref.load %arg1[%c140] : memref<154xf32, #tpu.memory_space<smem>>
    %572 = vector.broadcast %571 : f32 to vector<1x128xf32>
    %573 = arith.mulf %570, %572 : vector<1x128xf32>
    %cst_65 = arith.constant 0.000000e+00 : f32
    %574 = vector.broadcast %cst_65 : f32 to vector<1x128xf32>
    %575 = arith.cmpf olt, %568, %574 : vector<1x128xf32>
    %cst_66 = arith.constant 0x7F800000 : f32
    %576 = vector.broadcast %cst_66 : f32 to vector<1x128xf32>
    %577 = arith.select %575, %576, %568 : vector<1x128xi1>, vector<1x128xf32>
    %c146 = arith.constant 146 : index
    %578 = memref.load %arg1[%c146] : memref<154xf32, #tpu.memory_space<smem>>
    %579 = vector.broadcast %578 : f32 to vector<1x128xf32>
    %580 = arith.addf %577, %579 : vector<1x128xf32>
    %581 = arith.maximumf %553, %573 : vector<1x128xf32>
    %582 = arith.minimumf %554, %580 : vector<1x128xf32>
    %c102 = arith.constant 102 : index
    %583 = memref.load %arg1[%c102] : memref<154xf32, #tpu.memory_space<smem>>
    %584 = vector.broadcast %583 : f32 to vector<1x128xf32>
    %585 = arith.mulf %436, %584 : vector<1x128xf32>
    %c113 = arith.constant 113 : index
    %586 = memref.load %arg1[%c113] : memref<154xf32, #tpu.memory_space<smem>>
    %587 = vector.broadcast %586 : f32 to vector<1x128xf32>
    %588 = arith.mulf %440, %587 : vector<1x128xf32>
    %589 = arith.addf %585, %588 : vector<1x128xf32>
    %c124 = arith.constant 124 : index
    %590 = memref.load %arg1[%c124] : memref<154xf32, #tpu.memory_space<smem>>
    %591 = vector.broadcast %590 : f32 to vector<1x128xf32>
    %592 = arith.mulf %444, %591 : vector<1x128xf32>
    %593 = arith.addf %589, %592 : vector<1x128xf32>
    %c135 = arith.constant 135 : index
    %594 = memref.load %arg1[%c135] : memref<154xf32, #tpu.memory_space<smem>>
    %595 = vector.broadcast %594 : f32 to vector<1x128xf32>
    %596 = arith.subf %595, %593 : vector<1x128xf32>
    %cst_67 = arith.constant 0.000000e+00 : f32
    %597 = vector.broadcast %cst_67 : f32 to vector<1x128xf32>
    %598 = arith.maximumf %596, %597 : vector<1x128xf32>
    %c141 = arith.constant 141 : index
    %599 = memref.load %arg1[%c141] : memref<154xf32, #tpu.memory_space<smem>>
    %600 = vector.broadcast %599 : f32 to vector<1x128xf32>
    %601 = arith.mulf %598, %600 : vector<1x128xf32>
    %cst_68 = arith.constant 0.000000e+00 : f32
    %602 = vector.broadcast %cst_68 : f32 to vector<1x128xf32>
    %603 = arith.cmpf olt, %596, %602 : vector<1x128xf32>
    %cst_69 = arith.constant 0x7F800000 : f32
    %604 = vector.broadcast %cst_69 : f32 to vector<1x128xf32>
    %605 = arith.select %603, %604, %596 : vector<1x128xi1>, vector<1x128xf32>
    %c147 = arith.constant 147 : index
    %606 = memref.load %arg1[%c147] : memref<154xf32, #tpu.memory_space<smem>>
    %607 = vector.broadcast %606 : f32 to vector<1x128xf32>
    %608 = arith.addf %605, %607 : vector<1x128xf32>
    %609 = arith.maximumf %581, %601 : vector<1x128xf32>
    %610 = arith.minimumf %582, %608 : vector<1x128xf32>
    %c103 = arith.constant 103 : index
    %611 = memref.load %arg1[%c103] : memref<154xf32, #tpu.memory_space<smem>>
    %612 = vector.broadcast %611 : f32 to vector<1x128xf32>
    %613 = arith.mulf %436, %612 : vector<1x128xf32>
    %c114 = arith.constant 114 : index
    %614 = memref.load %arg1[%c114] : memref<154xf32, #tpu.memory_space<smem>>
    %615 = vector.broadcast %614 : f32 to vector<1x128xf32>
    %616 = arith.mulf %440, %615 : vector<1x128xf32>
    %617 = arith.addf %613, %616 : vector<1x128xf32>
    %c125 = arith.constant 125 : index
    %618 = memref.load %arg1[%c125] : memref<154xf32, #tpu.memory_space<smem>>
    %619 = vector.broadcast %618 : f32 to vector<1x128xf32>
    %620 = arith.mulf %444, %619 : vector<1x128xf32>
    %621 = arith.addf %617, %620 : vector<1x128xf32>
    %c136 = arith.constant 136 : index
    %622 = memref.load %arg1[%c136] : memref<154xf32, #tpu.memory_space<smem>>
    %623 = vector.broadcast %622 : f32 to vector<1x128xf32>
    %624 = arith.subf %623, %621 : vector<1x128xf32>
    %cst_70 = arith.constant 0.000000e+00 : f32
    %625 = vector.broadcast %cst_70 : f32 to vector<1x128xf32>
    %626 = arith.maximumf %624, %625 : vector<1x128xf32>
    %c142 = arith.constant 142 : index
    %627 = memref.load %arg1[%c142] : memref<154xf32, #tpu.memory_space<smem>>
    %628 = vector.broadcast %627 : f32 to vector<1x128xf32>
    %629 = arith.mulf %626, %628 : vector<1x128xf32>
    %cst_71 = arith.constant 0.000000e+00 : f32
    %630 = vector.broadcast %cst_71 : f32 to vector<1x128xf32>
    %631 = arith.cmpf olt, %624, %630 : vector<1x128xf32>
    %cst_72 = arith.constant 0x7F800000 : f32
    %632 = vector.broadcast %cst_72 : f32 to vector<1x128xf32>
    %633 = arith.select %631, %632, %624 : vector<1x128xi1>, vector<1x128xf32>
    %c148 = arith.constant 148 : index
    %634 = memref.load %arg1[%c148] : memref<154xf32, #tpu.memory_space<smem>>
    %635 = vector.broadcast %634 : f32 to vector<1x128xf32>
    %636 = arith.addf %633, %635 : vector<1x128xf32>
    %637 = arith.maximumf %609, %629 : vector<1x128xf32>
    %638 = arith.minimumf %610, %636 : vector<1x128xf32>
    %c104 = arith.constant 104 : index
    %639 = memref.load %arg1[%c104] : memref<154xf32, #tpu.memory_space<smem>>
    %640 = vector.broadcast %639 : f32 to vector<1x128xf32>
    %641 = arith.mulf %436, %640 : vector<1x128xf32>
    %c115 = arith.constant 115 : index
    %642 = memref.load %arg1[%c115] : memref<154xf32, #tpu.memory_space<smem>>
    %643 = vector.broadcast %642 : f32 to vector<1x128xf32>
    %644 = arith.mulf %440, %643 : vector<1x128xf32>
    %645 = arith.addf %641, %644 : vector<1x128xf32>
    %c126 = arith.constant 126 : index
    %646 = memref.load %arg1[%c126] : memref<154xf32, #tpu.memory_space<smem>>
    %647 = vector.broadcast %646 : f32 to vector<1x128xf32>
    %648 = arith.mulf %444, %647 : vector<1x128xf32>
    %649 = arith.addf %645, %648 : vector<1x128xf32>
    %c137 = arith.constant 137 : index
    %650 = memref.load %arg1[%c137] : memref<154xf32, #tpu.memory_space<smem>>
    %651 = vector.broadcast %650 : f32 to vector<1x128xf32>
    %652 = arith.subf %651, %649 : vector<1x128xf32>
    %cst_73 = arith.constant 0.000000e+00 : f32
    %653 = vector.broadcast %cst_73 : f32 to vector<1x128xf32>
    %654 = arith.maximumf %652, %653 : vector<1x128xf32>
    %c143 = arith.constant 143 : index
    %655 = memref.load %arg1[%c143] : memref<154xf32, #tpu.memory_space<smem>>
    %656 = vector.broadcast %655 : f32 to vector<1x128xf32>
    %657 = arith.mulf %654, %656 : vector<1x128xf32>
    %cst_74 = arith.constant 0.000000e+00 : f32
    %658 = vector.broadcast %cst_74 : f32 to vector<1x128xf32>
    %659 = arith.cmpf olt, %652, %658 : vector<1x128xf32>
    %cst_75 = arith.constant 0x7F800000 : f32
    %660 = vector.broadcast %cst_75 : f32 to vector<1x128xf32>
    %661 = arith.select %659, %660, %652 : vector<1x128xi1>, vector<1x128xf32>
    %c149 = arith.constant 149 : index
    %662 = memref.load %arg1[%c149] : memref<154xf32, #tpu.memory_space<smem>>
    %663 = vector.broadcast %662 : f32 to vector<1x128xf32>
    %664 = arith.addf %661, %663 : vector<1x128xf32>
    %665 = arith.maximumf %637, %657 : vector<1x128xf32>
    %666 = arith.minimumf %638, %664 : vector<1x128xf32>
    %c105 = arith.constant 105 : index
    %667 = memref.load %arg1[%c105] : memref<154xf32, #tpu.memory_space<smem>>
    %668 = vector.broadcast %667 : f32 to vector<1x128xf32>
    %669 = arith.mulf %436, %668 : vector<1x128xf32>
    %c116 = arith.constant 116 : index
    %670 = memref.load %arg1[%c116] : memref<154xf32, #tpu.memory_space<smem>>
    %671 = vector.broadcast %670 : f32 to vector<1x128xf32>
    %672 = arith.mulf %440, %671 : vector<1x128xf32>
    %673 = arith.addf %669, %672 : vector<1x128xf32>
    %c127 = arith.constant 127 : index
    %674 = memref.load %arg1[%c127] : memref<154xf32, #tpu.memory_space<smem>>
    %675 = vector.broadcast %674 : f32 to vector<1x128xf32>
    %676 = arith.mulf %444, %675 : vector<1x128xf32>
    %677 = arith.addf %673, %676 : vector<1x128xf32>
    %678 = arith.addf %79, %677 : vector<1x128xf32>
    %cst_76 = arith.constant 5.000000e-01 : f32
    %679 = vector.broadcast %cst_76 : f32 to vector<1x128xf32>
    %680 = arith.mulf %679, %678 : vector<1x128xf32>
    %681 = math.tanh %680 : vector<1x128xf32>
    %cst_77 = arith.constant 5.000000e-01 : f32
    %682 = vector.broadcast %cst_77 : f32 to vector<1x128xf32>
    %683 = arith.mulf %682, %681 : vector<1x128xf32>
    %cst_78 = arith.constant 5.000000e-01 : f32
    %684 = vector.broadcast %cst_78 : f32 to vector<1x128xf32>
    %685 = arith.addf %683, %684 : vector<1x128xf32>
    %686 = arith.subf %666, %665 : vector<1x128xf32>
    %687 = arith.mulf %685, %686 : vector<1x128xf32>
    %688 = arith.addf %687, %665 : vector<1x128xf32>
    %c150 = arith.constant 150 : index
    %689 = memref.load %arg1[%c150] : memref<154xf32, #tpu.memory_space<smem>>
    %690 = vector.broadcast %689 : f32 to vector<1x128xf32>
    %691 = arith.mulf %688, %690 : vector<1x128xf32>
    %692 = arith.addf %458, %691 : vector<1x128xf32>
    %c151 = arith.constant 151 : index
    %693 = memref.load %arg1[%c151] : memref<154xf32, #tpu.memory_space<smem>>
    %694 = vector.broadcast %693 : f32 to vector<1x128xf32>
    %695 = arith.mulf %688, %694 : vector<1x128xf32>
    %696 = arith.addf %472, %695 : vector<1x128xf32>
    %c152 = arith.constant 152 : index
    %697 = memref.load %arg1[%c152] : memref<154xf32, #tpu.memory_space<smem>>
    %698 = vector.broadcast %697 : f32 to vector<1x128xf32>
    %699 = arith.mulf %688, %698 : vector<1x128xf32>
    %700 = arith.addf %486, %699 : vector<1x128xf32>
    %c153 = arith.constant 153 : index
    %701 = memref.load %arg1[%c153] : memref<154xf32, #tpu.memory_space<smem>>
    %702 = vector.broadcast %701 : f32 to vector<1x128xf32>
    %703 = arith.mulf %688, %702 : vector<1x128xf32>
    %704 = arith.addf %500, %703 : vector<1x128xf32>
    %c0_79 = arith.constant 0 : index
    %c0_80 = arith.constant 0 : index
    %c0_81 = arith.constant 0 : index
    %705 = vector.load %arg3[%c0_79, %c0_80, %c0_81] : memref<4x1x128xf32, #tpu.memory_space<vmem>>, vector<1x1x128xf32>
    %706 = vector.shape_cast %705 : vector<1x1x128xf32> to vector<1x128xf32>
    %707 = vector.shape_cast %692 : vector<1x128xf32> to vector<1x1x128xf32>
    tpu.vector_store %arg3[%c0_79, %c0_80, %c0_81], %707 {strides = array<i32>} : memref<4x1x128xf32, #tpu.memory_space<vmem>>, vector<1x1x128xf32>,
    %c1_82 = arith.constant 1 : index
    %c0_83 = arith.constant 0 : index
    %c0_84 = arith.constant 0 : index
    %708 = vector.load %arg3[%c1_82, %c0_83, %c0_84] : memref<4x1x128xf32, #tpu.memory_space<vmem>>, vector<1x1x128xf32>
    %709 = vector.shape_cast %708 : vector<1x1x128xf32> to vector<1x128xf32>
    %710 = vector.shape_cast %696 : vector<1x128xf32> to vector<1x1x128xf32>
    tpu.vector_store %arg3[%c1_82, %c0_83, %c0_84], %710 {strides = array<i32>} : memref<4x1x128xf32, #tpu.memory_space<vmem>>, vector<1x1x128xf32>,
    %c2_85 = arith.constant 2 : index
    %c0_86 = arith.constant 0 : index
    %c0_87 = arith.constant 0 : index
    %711 = vector.load %arg3[%c2_85, %c0_86, %c0_87] : memref<4x1x128xf32, #tpu.memory_space<vmem>>, vector<1x1x128xf32>
    %712 = vector.shape_cast %711 : vector<1x1x128xf32> to vector<1x128xf32>
    %713 = vector.shape_cast %700 : vector<1x128xf32> to vector<1x1x128xf32>
    tpu.vector_store %arg3[%c2_85, %c0_86, %c0_87], %713 {strides = array<i32>} : memref<4x1x128xf32, #tpu.memory_space<vmem>>, vector<1x1x128xf32>,
    %c3_88 = arith.constant 3 : index
    %c0_89 = arith.constant 0 : index
    %c0_90 = arith.constant 0 : index
    %714 = vector.load %arg3[%c3_88, %c0_89, %c0_90] : memref<4x1x128xf32, #tpu.memory_space<vmem>>, vector<1x1x128xf32>
    %715 = vector.shape_cast %714 : vector<1x1x128xf32> to vector<1x128xf32>
    %716 = vector.shape_cast %704 : vector<1x128xf32> to vector<1x1x128xf32>
    tpu.vector_store %arg3[%c3_88, %c0_89, %c0_90], %716 {strides = array<i32>} : memref<4x1x128xf32, #tpu.memory_space<vmem>>, vector<1x1x128xf32>,
    return
  }
  func.func @transform_0(%arg0: i32) -> i32 {
    %c0_i32 = arith.constant 0 : i32
    %c0_i32_0 = arith.constant 0 : i32
    return %c0_i32 : i32
  }
  func.func @transform_1(%arg0: i32) -> (i32, i32, i32) {
    %c0_i32 = arith.constant 0 : i32
    %c0_i32_0 = arith.constant 0 : i32
    %c0_i32_1 = arith.constant 0 : i32
    return %c0_i32, %arg0, %c0_i32_0 : i32, i32, i32
  }
  func.func @transform_2(%arg0: i32) -> (i32, i32, i32) {
    %c0_i32 = arith.constant 0 : i32
    %c0_i32_0 = arith.constant 0 : i32
    %c0_i32_1 = arith.constant 0 : i32
    return %c0_i32, %arg0, %c0_i32_0 : i32, i32, i32
  }
}

</mosaic_0001>

<bundles_post_ra>
// kernel: tpu_custom_call.1
= control target key start
LH: loop header
LB: loop body
LE: loop exit
PB: predicated region body
PF: predicated region fallthrough
CT: control target
= control target key end

     0   :  { %7 = vsyncpa [#allocation5], 0  ;;  %s1467_s0 = inlined_call_operand.hbm [shape: f32[154], index: 0, kind: input, shape index: {}]   ;;  %s1468_s1 = inlined_call_operand.hbm [shape: f32[4,1,128], index: 1, kind: input, shape index: {}]   ;;  %s1469_s2 = inlined_call_operand.hbm [shape: f32[4,1,128], index: 2, kind: output, shape index: {}]  }
   0x1   :  { %8 = vsyncpa [#allocation3], 0 }
   0x2   :  { %9 = vsyncpa [#allocation4], 0  ;;  %s918_s9 = smov [#allocation2]   ;;  %s919_s12 = smov [#allocation6]  }
   0x3   :  { %17 = dma.hbm_to_smem %s1467_s0, 32, %s918_s9, [#allocation5]  }
   0x4   :  { %s23_s13 = sshll.u32 %s919_s12, 4  ;;  %s24_s13 = int_to_ptr.vmem [resolvable:$true] %s23_s13 }
   0x5   :  { %s880_s14 = scalar_lea.vmem %s24_s13, 64  ;;  %p885_p1 = scmp.lt.s32.totalorder %s24_s13, %s24_s13 }
   0x6   :  { %p881_p0 = scmp.ne.s32.totalorder %s24_s13, %s880_s14  ;;  %p886_p2 = scmp.lt.s32.totalorder %s880_s14, %s880_s14 }
   0x8   :  { %p887_p3 = por %p886_p2, %p885_p1 }
   0xa   :  { %p888_p4 = pnand %p887_p3, %p881_p0 }
   0xc   :  { %891 = shalt.err (!%p888_p4)
}
   0xd   :  { %s920_s15 = smov 16   ;;  %s921_s16 = smov 1  }
   0xe   :  { %29 = dma.hbm_to_vmem [thread:$0]  %s1468_s1, 64, %s24_s13, [#allocation3], %s920_s15, %s920_s15, %s921_s16  }
   0xf   :  { %912 = dma.done.wait [#allocation5], 32  }
  0x10   :  { %913 = vsyncadd [#allocation5], 4294967264 }
  0x11   :  { %914 = dma.done.wait [#allocation3], 64  }
  0x12   :  { %915 = vsyncadd [#allocation3], 4294967232 }
  0x13   :  { %36 = sfence }
  0x14   :  { %s44_s0 = sld [smem:[#allocation2]]  ;;  %v947_v0 = vld [vmem:[#allocation6] sm:$0x1]  ;;  %v949_v1 = vld [vmem:[#allocation6 + $0x1] sm:$0x1] }
  0x15   :  { %s698_s19 = sld [smem:[#allocation2 + $0x4]]  ;;  %v951_v2 = vld [vmem:[#allocation6 + $0x2] sm:$0x1]  ;;  %v953_v4 = vld [vmem:[#allocation6 + $0x3] sm:$0x1] }
  0x16   :  { %s699_s20 = sld [smem:[#allocation2 + $0x8]] }
  0x17   :  { %s700_s21 = sld [smem:[#allocation2 + $0xc]] }
  0x18   :  { %s701_s22 = sld [smem:[#allocation2 + $0x10]] }
  0x19   :  { %s712_s1 = sld [smem:[#allocation2 + $0x3]] }
  0x1a   :  { %v45_v3 = vstv %s44_s0  ;;  %s713_s23 = sld [smem:[#allocation2 + $0x7]] }
  0x1b   :  { %v46_v5 = vmul.f32 %v45_v3, %v947_v0  ;;  %v48_v6 = vstv %s698_s19  ;;  %s714_s24 = sld [smem:[#allocation2 + $0xb]] }
  0x1c   :  { %v49_v7 = vmul.f32 %v48_v6, %v949_v1  ;;  %v52_v8 = vstv %s699_s20  ;;  %s715_s25 = sld [smem:[#allocation2 + $0xf]] }
  0x1d   :  { %v53_v9 = vmul.f32 %v52_v8, %v951_v2  ;;  %v56_v10 = vstv %s700_s21  ;;  %s702_s26 = sld [smem:[#allocation2 + $0x1]] }
  0x1e   :  { %v50_v11 = vadd.f32 %v49_v7, %v46_v5  ;;  %v57_v12 = vmul.f32 %v56_v10, %v953_v4  ;;  %v60_v14 = vstv %s701_s22  ;;  %s703_s27 = sld [smem:[#allocation2 + $0x5]] }
  0x1f   :  { %v99_v18 = vstv %s712_s1  ;;  %s963_s28 = sld [smem:[#allocation2 + $0x9]] }
  0x20   :  { %v54_v13 = vadd.f32 %v53_v9, %v50_v11  ;;  %v100_v19 = vmul.f32 %v99_v18, %v947_v0  ;;  %v102_v20 = vstv %s713_s23  ;;  %s721_s29 = sld [smem:[#allocation2 + $0x16]] }
  0x21   :  { %v103_v21 = vmul.f32 %v102_v20, %v949_v1  ;;  %v106_v22 = vstv %s714_s24  ;;  %s725_s30 = sld [smem:[#allocation2 + $0x17]] }
  0x22   :  { %v58_v15 = vadd.f32 %v57_v12, %v54_v13  ;;  %v107_v23 = vmul.f32 %v106_v22, %v951_v2  ;;  %v110_v24 = vstv %s715_s25  ;;  %s967_s3 = sld [smem:[#allocation2 + $0x1f]] }
  0x23   :  { %v104_v25 = vadd.f32 %v103_v21, %v100_v19  ;;  %v111_v26 = vmul.f32 %v110_v24, %v953_v4  ;;  %s969_s4 = sld [smem:[#allocation2 + $0x20]]  ;;  %v63_v31 = vstv %s702_s26 }
  0x24   :  { %v61_v16 = vadd.f32 %v60_v14, %v58_v15  ;;  %s971_s5 = sld [smem:[#allocation2 + $0x18]]  ;;  %v66_v32 = vstv %s703_s27  ;;  %v64_v35 = vmul.f32 %v63_v31, %v947_v0 }
  0x25   :  { %v108_v27 = vadd.f32 %v107_v23, %v104_v25  ;;  %s973_s6 = sld [smem:[#allocation2 + $0xd]]  ;;  %v67_v36 = vmul.f32 %v66_v32, %v949_v1  ;;  %v70_v39 = vstv %s963_s28 }
  0x26   :  { %v116_v17 = vmul.f32 0.5, %v61_v16  ;;  %s975_s7 = sld [smem:[#allocation2 + $0x11]]  ;;  %v135_v37 = vstv %s721_s29  ;;  %v71_v47 = vmul.f32 %v70_v39, %v951_v2 }
  0x27   :  { %v965_v28 = vadd.f32 %v111_v26, %v108_v27  ;;  %s977_s8 = sld [smem:[#allocation2 + $0x21]]  ;;  %v150_v38 = vstv %s725_s30  ;;  %v68_v46 = vadd.f32 %v67_v36, %v64_v35 }
  0x28   :  { %856 = vtanh.f32 %v116_v17  ;;  %s979_s9 = sld [smem:[#allocation2 + $0x19]]  ;;  %v138_v41 = vstv %s967_s3 }
  0x29   :  { %s983_s10 = sld [smem:[#allocation2 + $0x25]]  ;;  %v153_v44 = vstv %s969_s4  ;;  %v72_v54 = vadd.f32 %v71_v47, %v68_v46 }
  0x2a   :  { %s988_s11 = sld [smem:[#allocation2 + $0x2b]]  ;;  %v167_v45 = vstv %s971_s5 }
  0x2b   :  { %s991_s12 = sld [smem:[#allocation2 + $0x22]]  ;;  %v74_v48 = vstv %s973_s6 }
  0x2c   :  { %s997_s13 = sld [smem:[#allocation2 + $0x1a]]  ;;  %v75_v55 = vmul.f32 %v74_v48, %v953_v4  ;;  %v78_v63 = vstv %s975_s7 }
  0x2d   :  { %s1000_s14 = sld [smem:[#allocation2 + $0x26]]  ;;  %v170_v52 = vstv %s977_s8 }
  0x2e   :  { %s1003_s17 = sld [smem:[#allocation2 + $0x2c]]  ;;  %v184_v53 = vstv %s979_s9  ;;  %v76_v62 = vadd.f32 %v75_v55, %v72_v54 }
  0x2f   :  { %s1006_s18 = sld [smem:[#allocation2 + $0x23]]  ;;  %v142_v3 = vstv %s983_s10 }
  0x30   :  { %s1010_s0 = sld [smem:[#allocation2 + $0x1b]]  ;;  %v147_v7 = vstv %s988_s11  ;;  %v79_v20 = vadd.f32 %v78_v63, %v76_v62 }
  0x31   :  { %s1013_s19 = sld [smem:[#allocation2 + $0x27]]  ;;  %v187_v60 = vstv %s991_s12 }
  0x32   :  { %s1015_s20 = sld [smem:[#allocation2 + $0x2d]]  ;;  %v201_v61 = vstv %s997_s13 }
  0x33   :  { %s1018_s21 = sld [smem:[#allocation2 + $0x1c]]  ;;  %v157_v5 = vstv %s1000_s14 }
  0x34   :  { %s1022_s22 = sld [smem:[#allocation2 + $0x24]]  ;;  %v162_v9 = vstv %s1003_s17 }
  0x35   :  { %v857_v29 = vpop.eup %856  ;;  %s1027_s1 = sld [smem:[#allocation2 + $0x28]]  ;;  %v204_v15 = vstv %s1006_s18 }
  0x36   :  { %v118_v30 = vmul.f32 0.5, %v857_v29  ;;  %s1032_s23 = sld [smem:[#allocation2 + $0x2e]]  ;;  %v218_v16 = vstv %s1010_s0 }
  0x37   :  { %v174_v19 = vstv %s1013_s19  ;;  %s1038_s24 = sld [smem:[#allocation2 + $0x29]] }
  0x38   :  { %v119_v33 = vadd.f32 0.5, %v118_v30  ;;  %v179_v22 = vstv %s1015_s20  ;;  %s1041_s25 = sld [smem:[#allocation2 + $0x2f]] }
  0x39   :  { %v235_v25 = vstv %s1018_s21  ;;  %s1047_s26 = sld [smem:[#allocation2 + $0x2a]] }
  0x3a   :  { %v120_v34 = vmul.f32 3.0, %v119_v33  ;;  %v221_v30 = vstv %s1022_s22  ;;  %s1051_s27 = sld [smem:[#allocation2 + $0x30]] }
  0x3b   :  { %v191_v33 = vstv %s1027_s1  ;;  %s1055_s28 = sld [smem:[#allocation2 + $0x2]] }
  0x3c   :  { %v986_v40 = vadd.f32 -1.0, %v120_v34  ;;  %v196_v36 = vstv %s1032_s23  ;;  %s1057_s29 = sld [smem:[#allocation2 + $0x6]] }
  0x3d   :  { %v208_v46 = vstv %s1038_s24  ;;  %s1059_s30 = sld [smem:[#allocation2 + $0xa]] }
  0x3e   :  { %v136_v42 = vmul.f32 %v135_v37, %v986_v40  ;;  %v151_v43 = vmul.f32 %v150_v38, %v986_v40  ;;  %v168_v51 = vmul.f32 %v167_v45, %v986_v40  ;;  %v185_v57 = vmul.f32 %v184_v53, %v986_v40  ;;  %s1063_s3 = sld [smem:[#allocation2 + $0xe]] }
  0x3f   :  { %v202_v12 = vmul.f32 %v201_v61, %v986_v40  ;;  %v219_v24 = vmul.f32 %v218_v16, %v986_v40  ;;  %v236_v34 = vmul.f32 %v235_v25, %v986_v40  ;;  %v213_v48 = vstv %s1041_s25  ;;  %s717_s4 = sld [smem:[#allocation2 + $0x14]] }
  0x40   :  { %v139_v49 = vsub.f32 %v138_v41, %v136_v42  ;;  %v154_v50 = vsub.f32 %v153_v44, %v151_v43  ;;  %v171_v56 = vsub.f32 %v170_v52, %v168_v51  ;;  %v188_v11 = vsub.f32 %v187_v60, %v185_v57  ;;  %s719_s5 = sld [smem:[#allocation2 + $0x15]] }
  0x41   :  { %v205_v23 = vsub.f32 %v204_v15, %v202_v12  ;;  %v222_v37 = vsub.f32 %v221_v30, %v219_v24  ;;  %v237_v38 = vadd.f32 %v236_v34, %v79_v20  ;;  %v225_v54 = vstv %s1047_s26  ;;  %s1065_s6 = sld [smem:[#allocation2 + $0x12]] }
  0x42   :  { %vm144_vm0 = vcmp.lt.f32.partialorder %v139_v49, 0.0  ;;  %vm159_vm1 = vcmp.lt.f32.partialorder %v154_v50, 0.0  ;;  %v140_v58 = vmax.f32 %v139_v49, 0.0  ;;  %v155_v59 = vmax.f32 %v154_v50, 0.0  ;;  %s1067_s7 = sld [smem:[#allocation2 + $0x1d]] }
  0x43   :  { %v145_v6 = vsel %vm144_vm0, inf, %v139_v49  ;;  %v160_v8 = vsel %vm159_vm1, inf, %v154_v50  ;;  %v172_v10 = vmax.f32 %v171_v56, 0.0  ;;  %vm176_vm2 = vcmp.lt.f32.partialorder %v171_v56, 0.0  ;;  %s1069_s8 = sld [smem:[#allocation2 + $0x1e]] }
  0x44   :  { %v143_v13 = vmul.f32 %v142_v3, %v140_v58  ;;  %v158_v14 = vmul.f32 %v157_v5, %v155_v59  ;;  %v148_v17 = vadd.f32 %v147_v7, %v145_v6  ;;  %v163_v18 = vadd.f32 %v162_v9, %v160_v8  ;;  %s1071_s9 = sld [smem:[#allocation2 + $0x31]] }
  0x45   :  { %v177_v21 = vsel %vm176_vm2, inf, %v171_v56  ;;  %vm193_vm3 = vcmp.lt.f32.partialorder %v188_v11, 0.0  ;;  %v175_v27 = vmul.f32 %v174_v19, %v172_v10  ;;  %v189_v29 = vmax.f32 %v188_v11, 0.0  ;;  %s1073_s10 = sld [smem:[#allocation2 + $0x32]] }
  0x46   :  { %v164_v26 = vmax.f32 %v143_v13, %v158_v14  ;;  %v165_v31 = vmin.f32 %v148_v17, %v163_v18  ;;  %v180_v32 = vadd.f32 %v179_v22, %v177_v21  ;;  %v194_v35 = vsel %vm193_vm3, inf, %v188_v11  ;;  %s1075_s11 = sld [smem:[#allocation2 + $0x36]] }
  0x47   :  { %vm210_vm4 = vcmp.lt.f32.partialorder %v205_v23, 0.0  ;;  %v192_v41 = vmul.f32 %v191_v33, %v189_v29  ;;  %v197_v43 = vadd.f32 %v196_v36, %v194_v35  ;;  %v206_v44 = vmax.f32 %v205_v23, 0.0  ;;  %s1077_s12 = sld [smem:[#allocation2 + $0x40]] }
  0x48   :  { %v181_v39 = vmax.f32 %v164_v26, %v175_v27  ;;  %v182_v42 = vmin.f32 %v165_v31, %v180_v32  ;;  %v238_v45 = vmul.f32 0.5, %v237_v38  ;;  %v211_v47 = vsel %vm210_vm4, inf, %v205_v23  ;;  %s1079_s13 = sld [smem:[#allocation2 + $0x4a]] }
  0x49   :  { %vm227_vm5 = vcmp.lt.f32.partialorder %v222_v37, 0.0  ;;  %v209_v51 = vmul.f32 %v208_v46, %v206_v44  ;;  %v214_v52 = vadd.f32 %v213_v48, %v211_v47  ;;  %v223_v53 = vmax.f32 %v222_v37, 0.0  ;;  %s1081_s14 = sld [smem:[#allocation2 + $0x37]] }
  0x4a   :  { %858 = vtanh.f32 %v238_v45  ;;  %v198_v49 = vmax.f32 %v181_v39, %v192_v41  ;;  %v199_v50 = vmin.f32 %v182_v42, %v197_v43  ;;  %v228_v55 = vsel %vm227_vm5, inf, %v222_v37  ;;  %s1083_s17 = sld [smem:[#allocation2 + $0x41]] }
  0x4b   :  { %v230_v56 = vstv %s1051_s27  ;;  %v226_v59 = vmul.f32 %v225_v54, %v223_v53  ;;  %v123_v3 = vstv %s717_s4  ;;  %v129_v5 = vstv %s719_s5  ;;  %s1089_s18 = sld [smem:[#allocation2 + $0x38]] }
  0x4c   :  { %v215_v57 = vmax.f32 %v198_v49, %v209_v51  ;;  %v216_v58 = vmin.f32 %v199_v50, %v214_v52  ;;  %v231_v60 = vadd.f32 %v230_v56, %v228_v55  ;;  %v81_v9 = vstv %s1055_s28  ;;  %s1093_s0 = sld [smem:[#allocation2 + $0x42]] }
  0x4d   :  { %v84_v10 = vstv %s1057_s29  ;;  %v124_v11 = vmul.f32 %v123_v3, %v986_v40  ;;  %v130_v12 = vmul.f32 %v129_v5, %v986_v40  ;;  %v126_v13 = vstv %s1067_s7  ;;  %s1097_s19 = sld [smem:[#allocation2 + $0x50]] }
  0x4e   :  { %v232_v61 = vmax.f32 %v215_v57, %v226_v59  ;;  %v233_v62 = vmin.f32 %v216_v58, %v231_v60  ;;  %v132_v14 = vstv %s1069_s8  ;;  %v246_v16 = vstv %s1071_s9  ;;  %s1102_s20 = sld [smem:[#allocation2 + $0x4b]] }
  0x4f   :  { %v250_v17 = vstv %s1073_s10  ;;  %v82_v18 = vmul.f32 %v81_v9, %v947_v0  ;;  %v85_v19 = vmul.f32 %v84_v10, %v949_v1  ;;  %v88_v20 = vstv %s1059_s30  ;;  %s1104_s21 = sld [smem:[#allocation2 + $0x39]] }
  0x50   :  { %v242_v7 = vsub.f32 %v233_v62, %v232_v61  ;;  %v127_v21 = vadd.f32 %v126_v13, %v124_v11  ;;  %v133_v22 = vadd.f32 %v132_v14, %v130_v12  ;;  %s1106_s22 = sld [smem:[#allocation2 + $0x43]]  ;;  %v89_v0 = vmul.f32 %v88_v20, %v951_v2 }
  0x51   :  { %s1109_s1 = sld [smem:[#allocation2 + $0x3a]]  ;;  %v86_v1 = vadd.f32 %v85_v19, %v82_v18  ;;  %v92_v25 = vstv %s1063_s3  ;;  %v284_v26 = vstv %s1075_s11  ;;  %v287_v27 = vstv %s1077_s12 }
  0x52   :  { %s1114_s23 = sld [smem:[#allocation2 + $0x44]]  ;;  %v303_v31 = vstv %s1081_s14  ;;  %v306_v32 = vstv %s1083_s17  ;;  %v324_v33 = vstv %s1089_s18  ;;  %v327_v2 = vstv %s1093_s0 }
  0x53   :  { %s1120_s24 = sld [smem:[#allocation2 + $0x56]]  ;;  %v90_v36 = vadd.f32 %v89_v0, %v86_v1  ;;  %v93_v37 = vmul.f32 %v92_v25, %v953_v4  ;;  %v291_v45 = vstv %s1079_s13  ;;  %v96_v48 = vstv %s1065_s6 }
  0x54   :  { %s1126_s25 = sld [smem:[#allocation2 + $0x4c]]  ;;  %v310_v4 = vstv %s1102_s20 }
  0x55   :  { %s1130_s26 = sld [smem:[#allocation2 + $0x51]]  ;;  %v345_v44 = vstv %s1104_s21  ;;  %v94_v49 = vadd.f32 %v93_v37, %v90_v36 }
  0x56   :  { %s1135_s27 = sld [smem:[#allocation2 + $0x57]]  ;;  %v348_v47 = vstv %s1106_s22 }
  0x57   :  { %v859_v63 = vpop.eup %858  ;;  %s1140_s28 = sld [smem:[#allocation2 + $0x4d]]  ;;  %v366_v51 = vstv %s1109_s1  ;;  %v97_v58 = vadd.f32 %v96_v48, %v94_v49 }
  0x58   :  { %v240_v6 = vmul.f32 0.5, %v859_v63  ;;  %s1145_s29 = sld [smem:[#allocation2 + $0x3b]]  ;;  %v369_v52 = vstv %s1114_s23 }
  0x59   :  { %s1148_s30 = sld [smem:[#allocation2 + $0x45]] }
  0x5a   :  { %v241_v8 = vadd.f32 0.5, %v240_v6  ;;  %s1150_s3 = sld [smem:[#allocation2 + $0x52]]  ;;  %v331_v57 = vstv %s1126_s25 }
  0x5b   :  { %s1155_s4 = sld [smem:[#allocation2 + $0x58]]  ;;  %v314_v9 = vstv %s1130_s26 }
  0x5c   :  { %v243_v15 = vmul.f32 %v242_v7, %v241_v8  ;;  %s1159_s5 = sld [smem:[#allocation2 + $0x4e]]  ;;  %v295_v7 = vstv %s1097_s19  ;;  %v300_v8 = vstv %s1120_s24  ;;  %v319_v13 = vstv %s1135_s27 }
  0x5d   :  { %s1161_s6 = sld [smem:[#allocation2 + $0x3c]]  ;;  %v352_v5 = vstv %s1140_s28 }
  0x5e   :  { %v244_v40 = vadd.f32 %v243_v15, %v232_v61  ;;  %s1165_s7 = sld [smem:[#allocation2 + $0x46]]  ;;  %v387_v6 = vstv %s1145_s29 }
  0x5f   :  { %s1169_s8 = sld [smem:[#allocation2 + $0x4f]]  ;;  %v390_v10 = vstv %s1148_s30 }
  0x60   :  { %v247_v23 = vmul.f32 %v246_v16, %v244_v40  ;;  %v251_v24 = vmul.f32 %v250_v17, %v244_v40  ;;  %s1174_s9 = sld [smem:[#allocation2 + $0x53]] }
  0x61   :  { %s1178_s10 = sld [smem:[#allocation2 + $0x59]]  ;;  %v340_v1 = vstv %s1155_s4 }
  0x62   :  { %v1116_v29 = vadd.f32 %v247_v23, %v127_v21  ;;  %v1118_v30 = vadd.f32 %v251_v24, %v133_v22  ;;  %v373_v40 = vstv %s1159_s5  ;;  %s1183_s11 = sld [smem:[#allocation2 + $0x54]]  ;;  %v335_v23 = vstv %s1150_s3 }
  0x63   :  { %v408_v24 = vstv %s1161_s6  ;;  %s1188_s12 = sld [smem:[#allocation2 + $0x5a]] }
  0x64   :  { %v285_v34 = vmul.f32 %v284_v26, %v1116_v29  ;;  %v288_v35 = vmul.f32 %v287_v27, %v1118_v30  ;;  %v304_v38 = vmul.f32 %v303_v31, %v1116_v29  ;;  %v307_v39 = vmul.f32 %v306_v32, %v1118_v30  ;;  %s1194_s13 = sld [smem:[#allocation2 + $0x55]] }
  0x65   :  { %v325_v42 = vmul.f32 %v324_v33, %v1116_v29  ;;  %v328_v43 = vmul.f32 %v327_v2, %v1118_v30  ;;  %v346_v50 = vmul.f32 %v345_v44, %v1116_v29  ;;  %v349_v56 = vmul.f32 %v348_v47, %v1118_v30  ;;  %s1198_s14 = sld [smem:[#allocation2 + $0x5b]] }
  0x66   :  { %v289_v41 = vadd.f32 %v288_v35, %v285_v34  ;;  %v308_v46 = vadd.f32 %v307_v39, %v304_v38  ;;  %v367_v59 = vmul.f32 %v366_v51, %v1116_v29  ;;  %v370_v60 = vmul.f32 %v369_v52, %v1118_v30  ;;  %s1201_s17 = sld [smem:[#allocation2 + $0x13]] }
  0x67   :  { %v329_v55 = vadd.f32 %v328_v43, %v325_v42  ;;  %v350_v62 = vadd.f32 %v349_v56, %v346_v50  ;;  %v388_v16 = vmul.f32 %v387_v6, %v1116_v29  ;;  %v391_v17 = vmul.f32 %v390_v10, %v1118_v30  ;;  %s1204_s18 = sld [smem:[#allocation2 + $0x33]] }
  0x68   :  { %v292_v53 = vsub.f32 %v291_v45, %v289_v41  ;;  %v311_v54 = vsub.f32 %v310_v4, %v308_v46  ;;  %v371_v14 = vadd.f32 %v370_v60, %v367_v59  ;;  %v409_v25 = vmul.f32 %v408_v24, %v1116_v29  ;;  %s1206_s0 = sld [smem:[#allocation2 + $0x3d]] }
  0x69   :  { %v332_v61 = vsub.f32 %v331_v57, %v329_v55  ;;  %v353_v15 = vsub.f32 %v352_v5, %v350_v62  ;;  %v411_v26 = vstv %s1165_s7  ;;  %v392_v31 = vadd.f32 %v391_v17, %v388_v16  ;;  %s1208_s19 = sld [smem:[#allocation2 + $0x47]] }
  0x6a   :  { %vm297_vm6 = vcmp.lt.f32.partialorder %v292_v53, 0.0  ;;  %vm316_vm7 = vcmp.lt.f32.partialorder %v311_v54, 0.0  ;;  %v293_v63 = vmax.f32 %v292_v53, 0.0  ;;  %v312_v3 = vmax.f32 %v311_v54, 0.0  ;;  %s1210_s20 = sld [smem:[#allocation2 + $0x34]] }
  0x6b   :  { %v298_v11 = vsel %vm297_vm6, inf, %v292_v53  ;;  %v317_v12 = vsel %vm316_vm7, inf, %v311_v54  ;;  %vm337_vm8 = vcmp.lt.f32.partialorder %v332_v61, 0.0  ;;  %v333_v20 = vmax.f32 %v332_v61, 0.0  ;;  %s752_s21 = sld [smem:[#allocation2 + $0x3e]] }
  0x6c   :  { %v296_v18 = vmul.f32 %v295_v7, %v293_v63  ;;  %v315_v19 = vmul.f32 %v314_v9, %v312_v3  ;;  %v301_v21 = vadd.f32 %v300_v8, %v298_v11  ;;  %v320_v22 = vadd.f32 %v319_v13, %v317_v12  ;;  %s1214_s22 = sld [smem:[#allocation2 + $0x48]] }
  0x6d   :  { %v338_v0 = vsel %vm337_vm8, inf, %v332_v61  ;;  %vm358_vm9 = vcmp.lt.f32.partialorder %v353_v15, 0.0  ;;  %v374_v27 = vsub.f32 %v373_v40, %v371_v14  ;;  %v412_v32 = vmul.f32 %v411_v26, %v1118_v30  ;;  %s1216_s1 = sld [smem:[#allocation2 + $0x35]] }
  0x6e   :  { %v321_v33 = vmax.f32 %v296_v18, %v315_v19  ;;  %v336_v2 = vmul.f32 %v335_v23, %v333_v20  ;;  %v394_v34 = vstv %s1169_s8  ;;  %v322_v35 = vmin.f32 %v301_v21, %v320_v22  ;;  %s755_s23 = sld [smem:[#allocation2 + $0x3f]] }
  0x6f   :  { %v341_v36 = vadd.f32 %v340_v1, %v338_v0  ;;  %v354_v37 = vmax.f32 %v353_v15, 0.0  ;;  %v413_v38 = vadd.f32 %v412_v32, %v409_v25  ;;  %v356_v39 = vstv %s1174_s9  ;;  %s1218_s24 = sld [smem:[#allocation2 + $0x49]] }
  0x70   :  { %v359_v41 = vsel %vm358_vm9, inf, %v353_v15  ;;  %v361_v42 = vstv %s1178_s10  ;;  %vm379_vm10 = vcmp.lt.f32.partialorder %v374_v27, 0.0  ;;  %v395_v43 = vsub.f32 %v394_v34, %v392_v31  ;;  %s1220_s25 = sld [smem:[#allocation2 + $0x5c]] }
  0x71   :  { %v414_v44 = vadd.f32 %v413_v38, %v97_v58  ;;  %v342_v45 = vmax.f32 %v321_v33, %v336_v2  ;;  %v375_v46 = vmax.f32 %v374_v27, 0.0  ;;  %v377_v4 = vstv %s1183_s11  ;;  %s1222_s26 = sld [smem:[#allocation2 + $0x5d]] }
  0x72   :  { %v343_v47 = vmin.f32 %v322_v35, %v341_v36  ;;  %v357_v48 = vmul.f32 %v356_v39, %v354_v37  ;;  %v362_v49 = vadd.f32 %v361_v42, %v359_v41  ;;  %v380_v51 = vsel %vm379_vm10, inf, %v374_v27  ;;  %s1224_s27 = sld [smem:[#allocation2 + $0x5e]] }
  0x73   :  { %v415_v50 = vmul.f32 0.5, %v414_v44  ;;  %v382_v52 = vstv %s1188_s12  ;;  %vm400_vm11 = vcmp.lt.f32.partialorder %v395_v43, 0.0  ;;  %v378_v53 = vmul.f32 %v377_v4, %v375_v46  ;;  %s1228_s28 = sld [smem:[#allocation2 + $0x5f]] }
  0x74   :  { %v363_v54 = vmax.f32 %v342_v45, %v357_v48  ;;  %v364_v55 = vmin.f32 %v343_v47, %v362_v49  ;;  %v383_v56 = vadd.f32 %v382_v52, %v380_v51  ;;  %v396_v57 = vmax.f32 %v395_v43, 0.0  ;;  %s1231_s29 = sld [smem:[#allocation2 + $0x63]] }
  0x75   :  { %860 = vtanh.f32 %v415_v50  ;;  %v398_v58 = vstv %s1194_s13  ;;  %v401_v59 = vsel %vm400_vm11, inf, %v395_v43  ;;  %v403_v60 = vstv %s1198_s14  ;;  %s1233_s30 = sld [smem:[#allocation2 + $0x6e]] }
  0x76   :  { %v384_v61 = vmax.f32 %v363_v54, %v378_v53  ;;  %v385_v62 = vmin.f32 %v364_v55, %v383_v56  ;;  %v399_v63 = vmul.f32 %v398_v58, %v396_v57  ;;  %v404_v3 = vadd.f32 %v403_v60, %v401_v59  ;;  %s1238_s3 = sld [smem:[#allocation2 + $0x79]] }
  0x77   :  { %v254_v7 = vstv %s1204_s18  ;;  %v257_v8 = vstv %s1206_s0  ;;  %v264_v10 = vstv %s1210_s20  ;;  %v267_v11 = vstv %s752_s21  ;;  %s1242_s4 = sld [smem:[#allocation2 + $0x84]] }
  0x78   :  { %v405_v5 = vmax.f32 %v384_v61, %v399_v63  ;;  %v406_v6 = vmin.f32 %v385_v62, %v404_v3  ;;  %v255_v14 = vmul.f32 %v254_v7, %v1116_v29  ;;  %v258_v15 = vmul.f32 %v257_v8, %v1118_v30  ;;  %s1244_s5 = sld [smem:[#allocation2 + $0x8a]] }
  0x79   :  { %v274_v16 = vstv %s1216_s1  ;;  %v277_v17 = vstv %s755_s23  ;;  %v265_v18 = vmul.f32 %v264_v10, %v1116_v29  ;;  %v268_v19 = vmul.f32 %v267_v11, %v1118_v30  ;;  %s1248_s6 = sld [smem:[#allocation2 + $0x90]] }
  0x7a   :  { %v419_v13 = vsub.f32 %v406_v6, %v405_v5  ;;  %v275_v40 = vmul.f32 %v274_v16, %v1116_v29  ;;  %v278_v21 = vmul.f32 %v277_v17, %v1118_v30  ;;  %v259_v23 = vadd.f32 %v258_v15, %v255_v14  ;;  %s1250_s7 = sld [smem:[#allocation2 + $0x64]] }
  0x7b   :  { %v261_v24 = vstv %s1208_s19  ;;  %v269_v0 = vadd.f32 %v268_v19, %v265_v18  ;;  %v423_v25 = vstv %s1220_s25  ;;  %s1254_s8 = sld [smem:[#allocation2 + $0x6f]]  ;;  %v271_v26 = vstv %s1214_s22 }
  0x7c   :  { %v427_v27 = vstv %s1222_s26  ;;  %s1258_s9 = sld [smem:[#allocation2 + $0x7a]]  ;;  %v279_v29 = vadd.f32 %v278_v21, %v275_v40  ;;  %v262_v30 = vadd.f32 %v261_v24, %v259_v23  ;;  %v281_v31 = vstv %s1218_s24 }
  0x7d   :  { %s1260_s10 = sld [smem:[#allocation2 + $0x65]]  ;;  %v431_v33 = vstv %s1224_s27  ;;  %v272_v2 = vadd.f32 %v271_v26, %v269_v0  ;;  %v491_v37 = vstv %s1231_s29  ;;  %v494_v39 = vstv %s1233_s30 }
  0x7e   :  { %s1264_s11 = sld [smem:[#allocation2 + $0x70]]  ;;  %v282_v35 = vadd.f32 %v281_v31, %v279_v29  ;;  %v498_v45 = vstv %s1238_s3  ;;  %v502_v62 = vstv %s1242_s4  ;;  %v506_v40 = vstv %s1244_s5 }
  0x7f   :  { %s1266_s12 = sld [smem:[#allocation2 + $0x66]]  ;;  %v511_v23 = vstv %s1248_s6 }
  0x80   :  { %s1268_s13 = sld [smem:[#allocation2 + $0x71]]  ;;  %v514_v42 = vstv %s1250_s7 }
  0x81   :  { %s1271_s14 = sld [smem:[#allocation2 + $0x85]]  ;;  %v517_v43 = vstv %s1254_s8 }
  0x82   :  { %v861_v9 = vpop.eup %860  ;;  %s1276_s18 = sld [smem:[#allocation2 + $0x7b]]  ;;  %v521_v47 = vstv %s1258_s9 }
  0x83   :  { %v417_v12 = vmul.f32 0.5, %v861_v9  ;;  %s1282_s0 = sld [smem:[#allocation2 + $0x7c]]  ;;  %v539_v50 = vstv %s1260_s10 }
  0x84   :  { %s1286_s19 = sld [smem:[#allocation2 + $0x67]]  ;;  %v542_v51 = vstv %s1264_s11 }
  0x85   :  { %v418_v20 = vadd.f32 0.5, %v417_v12  ;;  %s1292_s20 = sld [smem:[#allocation2 + $0x72]]  ;;  %v564_v54 = vstv %s1266_s12 }
  0x86   :  { %s1296_s21 = sld [smem:[#allocation2 + $0x8b]]  ;;  %v567_v55 = vstv %s1268_s13 }
  0x87   :  { %v420_v22 = vmul.f32 %v419_v13, %v418_v20  ;;  %s1301_s22 = sld [smem:[#allocation2 + $0x7d]]  ;;  %v525_v11 = vstv %s1271_s14  ;;  %v114_v20 = vstv %s1201_s17 }
  0x88   :  { %s1303_s1 = sld [smem:[#allocation2 + $0x91]]  ;;  %v546_v60 = vstv %s1276_s18 }
  0x89   :  { %v421_v1 = vadd.f32 %v420_v22, %v405_v5  ;;  %s1310_s23 = sld [smem:[#allocation2 + $0x86]]  ;;  %v571_v5 = vstv %s1282_s0 }
  0x8a   :  { %s1313_s24 = sld [smem:[#allocation2 + $0x8c]]  ;;  %v589_v6 = vstv %s1286_s19 }
  0x8b   :  { %v424_v32 = vmul.f32 %v423_v25, %v421_v1  ;;  %v428_v34 = vmul.f32 %v427_v27, %v421_v1  ;;  %v432_v36 = vmul.f32 %v431_v33, %v421_v1  ;;  %s1316_s25 = sld [smem:[#allocation2 + $0x68]]  ;;  %v592_v10 = vstv %s1292_s20 }
  0x8c   :  { %s1322_s26 = sld [smem:[#allocation2 + $0x73]]  ;;  %v529_v27 = vstv %s1296_s21 }
  0x8d   :  { %v1273_v38 = vadd.f32 %v424_v32, %v262_v30  ;;  %v1278_v41 = vadd.f32 %v428_v34, %v272_v2  ;;  %v1288_v46 = vadd.f32 %v432_v36, %v282_v35  ;;  %s1325_s27 = sld [smem:[#allocation2 + $0x87]]  ;;  %v596_v13 = vstv %s1301_s22 }
  0x8e   :  { %s1329_s29 = sld [smem:[#allocation2 + $0x7e]]  ;;  %v534_v35 = vstv %s1303_s1 }
  0x8f   :  { %v492_v44 = vmul.f32 %v491_v37, %v1273_v38  ;;  %v495_v4 = vmul.f32 %v494_v39, %v1278_v41  ;;  %v515_v48 = vmul.f32 %v514_v42, %v1273_v38  ;;  %v518_v49 = vmul.f32 %v517_v43, %v1278_v41  ;;  %s1332_s30 = sld [smem:[#allocation2 + $0x88]] }
  0x90   :  { %v499_v53 = vmul.f32 %v498_v45, %v1288_v46  ;;  %v522_v57 = vmul.f32 %v521_v47, %v1288_v46  ;;  %v540_v58 = vmul.f32 %v539_v50, %v1273_v38  ;;  %v543_v59 = vmul.f32 %v542_v51, %v1278_v41  ;;  %s1334_s3 = sld [smem:[#allocation2 + $0x6a]] }
  0x91   :  { %v496_v52 = vadd.f32 %v495_v4, %v492_v44  ;;  %v519_v56 = vadd.f32 %v518_v49, %v515_v48  ;;  %v565_v63 = vmul.f32 %v564_v54, %v1273_v38  ;;  %v568_v3 = vmul.f32 %v567_v55, %v1278_v41  ;;  %s1339_s4 = sld [smem:[#allocation2 + $0x69]] }
  0x92   :  { %v544_v8 = vadd.f32 %v543_v59, %v540_v58  ;;  %v547_v9 = vmul.f32 %v546_v60, %v1288_v46  ;;  %v572_v15 = vmul.f32 %v571_v5, %v1288_v46  ;;  %v590_v16 = vmul.f32 %v589_v6, %v1273_v38  ;;  %s1344_s7 = sld [smem:[#allocation2 + $0x74]] }
  0x93   :  { %v500_v61 = vadd.f32 %v499_v53, %v496_v52  ;;  %v523_v7 = vadd.f32 %v522_v57, %v519_v56  ;;  %v569_v14 = vadd.f32 %v568_v3, %v565_v63  ;;  %v593_v17 = vmul.f32 %v592_v10, %v1278_v41  ;;  %s1348_s8 = sld [smem:[#allocation2 + $0x7f]] }
  0x94   :  { %v548_v19 = vadd.f32 %v547_v9, %v544_v8  ;;  %v550_v21 = vstv %s1310_s23  ;;  %v597_v24 = vmul.f32 %v596_v13, %v1288_v46  ;;  %s1350_s9 = sld [smem:[#allocation2 + $0x92]]  ;;  %v614_v25 = vstv %s1316_s25 }
  0x95   :  { %v503_v12 = vsub.f32 %v502_v62, %v500_v61  ;;  %v526_v18 = vsub.f32 %v525_v11, %v523_v7  ;;  %v573_v0 = vadd.f32 %v572_v15, %v569_v14  ;;  %v594_v1 = vadd.f32 %v593_v17, %v590_v16  ;;  %s1354_s17 = sld [smem:[#allocation2 + $0x75]] }
  0x96   :  { %v617_v26 = vstv %s1322_s26  ;;  %v551_v29 = vsub.f32 %v550_v21, %v548_v19  ;;  %v575_v30 = vstv %s1325_s27  ;;  %v615_v32 = vmul.f32 %v614_v25, %v1273_v38  ;;  %s1361_s5 = sld [smem:[#allocation2 + $0x89]] }
  0x97   :  { %v504_v22 = vmax.f32 %v503_v12, 0.0  ;;  %vm508_vm12 = vcmp.lt.f32.partialorder %v503_v12, 0.0  ;;  %vm531_vm13 = vcmp.lt.f32.partialorder %v526_v18, 0.0  ;;  %v527_v31 = vmax.f32 %v526_v18, 0.0  ;;  %s1366_s6 = sld [smem:[#allocation2 + $0x8d]] }
  0x98   :  { %v618_v33 = vmul.f32 %v617_v26, %v1278_v41  ;;  %v621_v2 = vstv %s1329_s29  ;;  %v509_v34 = vsel %vm508_vm12, inf, %v503_v12  ;;  %v554_v36 = vstv %s1313_s24  ;;  %s1369_s10 = sld [smem:[#allocation2 + $0x93]] }
  0x99   :  { %v600_v37 = vstv %s1332_s30  ;;  %v507_v39 = vmul.f32 %v506_v40, %v504_v22  ;;  %v532_v42 = vsel %vm531_vm13, inf, %v526_v18  ;;  %v576_v43 = vsub.f32 %v575_v30, %v573_v0  ;;  %s1371_s11 = sld [smem:[#allocation2 + $0x60]] }
  0x9a   :  { %v598_v44 = vadd.f32 %v597_v24, %v594_v1  ;;  %vm556_vm14 = vcmp.lt.f32.partialorder %v551_v29, 0.0  ;;  %v619_v45 = vadd.f32 %v618_v33, %v615_v32  ;;  %v622_v4 = vmul.f32 %v621_v2, %v1288_v46  ;;  %s1375_s12 = sld [smem:[#allocation2 + $0x6b]] }
  0x9b   :  { %v639_v47 = vstv %s1339_s4  ;;  %v530_v48 = vmul.f32 %v529_v27, %v527_v31  ;;  %v552_v49 = vmax.f32 %v551_v29, 0.0  ;;  %v642_v51 = vstv %s1344_s7  ;;  %s1379_s13 = sld [smem:[#allocation2 + $0x8e]]  ;;  %s922_s7 = smov [#allocation7]  }
  0x9c   :  { %v640_v50 = vmul.f32 %v639_v47, %v1273_v38  ;;  %v512_v52 = vadd.f32 %v511_v23, %v509_v34  ;;  %v535_v53 = vadd.f32 %v534_v35, %v532_v42  ;;  %v643_v54 = vmul.f32 %v642_v51, %v1278_v41  ;;  %s1385_s14 = sld [smem:[#allocation2 + $0x94]] }
  0x9d   :  { %v646_v55 = vstv %s1348_s8  ;;  %v115_v56 = vadd.f32 %v114_v20, %v965_v28  ;;  %v557_v57 = vsel %vm556_vm14, inf, %v551_v29  ;;  %v559_v58 = vstv %s1350_s9  ;;  %s1388_s18 = sld [smem:[#allocation2 + $0x61]]  ;;  %s685_s8 = sshll.u32 %s922_s7, 4  ;;  %s686_s8 = int_to_ptr.vmem [resolvable:$true] %s685_s8 }
  0x9e   :  { %v647_v59 = vmul.f32 %v646_v55, %v1288_v46  ;;  %vm581_vm15 = vcmp.lt.f32.partialorder %v576_v43, 0.0  ;;  %v601_v60 = vsub.f32 %v600_v37, %v598_v44  ;;  %v623_v61 = vadd.f32 %v622_v4, %v619_v45  ;;  %s1390_s0 = sld [smem:[#allocation2 + $0x6c]]  ;;  %s892_s9 = scalar_lea.vmem %s686_s8, 64 }
  0x9f   :  { %v644_v62 = vadd.f32 %v643_v54, %v640_v50  ;;  %v536_v63 = vmax.f32 %v507_v39, %v530_v48  ;;  %v555_v3 = vmul.f32 %v554_v36, %v552_v49  ;;  %v577_v5 = vmax.f32 %v576_v43, 0.0  ;;  %s1394_s19 = sld [smem:[#allocation2 + $0x8f]]  ;;  %p893_p5 = scmp.ne.s32.totalorder %s686_s8, %s892_s9 }
  0xa0   :  { %v625_v28 = vstv %s1361_s5  ;;  %v537_v6 = vmin.f32 %v512_v52, %v535_v53  ;;  %v560_v7 = vadd.f32 %v559_v58, %v557_v57  ;;  %v579_v8 = vstv %s1366_s6  ;;  %s1397_s20 = sld [smem:[#allocation2 + $0x95]]  ;;  %p897_p6 = scmp.lt.s32.totalorder %s686_s8, %s686_s8 }
  0xa1   :  { %v648_v9 = vadd.f32 %v647_v59, %v644_v62  ;;  %v582_v10 = vsel %vm581_vm15, inf, %v576_v43  ;;  %v584_v11 = vstv %s1369_s10  ;;  %s1399_s21 = sld [smem:[#allocation2 + $0x62]]  ;;  %vm606_vm0 = vcmp.lt.f32.partialorder %v601_v60, 0.0  ;;  %p898_p7 = scmp.lt.s32.totalorder %s892_s9, %s892_s9 }
  0xa2   :  { %v626_v12 = vsub.f32 %v625_v28, %v623_v61  ;;  %s1401_s22 = sld [smem:[#allocation2 + $0x6d]]  ;;  %v561_v14 = vmax.f32 %v536_v63, %v555_v3  ;;  %v580_v15 = vmul.f32 %v579_v8, %v577_v5  ;;  %v562_v16 = vmin.f32 %v537_v6, %v560_v7 }
  0xa3   :  { %v649_v13 = vadd.f32 %v648_v9, %v115_v56  ;;  %s1403_s1 = sld [smem:[#allocation2 + $0x76]]  ;;  %v585_v17 = vadd.f32 %v584_v11, %v582_v10  ;;  %v602_v18 = vmax.f32 %v601_v60, 0.0  ;;  %v604_v20 = vstv %s1379_s13  ;;  %p899_p8 = por %p898_p7, %p897_p6 }
  0xa4   :  { %s1405_s23 = sld [smem:[#allocation2 + $0x77]]  ;;  %v607_v40 = vsel %vm606_vm0, inf, %v601_v60  ;;  %v609_v21 = vstv %s1385_s14  ;;  %vm631_vm1 = vcmp.lt.f32.partialorder %v626_v12, 0.0  ;;  %v435_v22 = vstv %s1228_s28 }
  0xa5   :  { %v650_v19 = vmul.f32 0.5, %v649_v13  ;;  %v438_v23 = vstv %s1334_s3  ;;  %s1411_s24 = sld [smem:[#allocation2 + $0x78]]  ;;  %v586_v24 = vmax.f32 %v561_v14, %v580_v15  ;;  %v587_v0 = vmin.f32 %v562_v16, %v585_v17  ;;  %p900_p9 = pnand %p899_p8, %p893_p5 }
  0xa6   :  { %v605_v1 = vmul.f32 %v604_v20, %v602_v18  ;;  %v610_v25 = vadd.f32 %v609_v21, %v607_v40  ;;  %v627_v26 = vmax.f32 %v626_v12, 0.0  ;;  %v442_v27 = vstv %s1354_s17  ;;  %s1416_s25 = sld [smem:[#allocation2 + $0x80]] }
  0xa7   :  { %862 = vtanh.f32 %v650_v19  ;;  %v629_v29 = vstv %s1394_s19  ;;  %v632_v30 = vsel %vm631_vm1, inf, %v626_v12  ;;  %v634_v31 = vstv %s1397_s20  ;;  %s1424_s28 = sld [smem:[#allocation2 + $0x81]] }
  0xa8   :  { %v449_v32 = vstv %s1371_s11  ;;  %v452_v33 = vstv %s1375_s12  ;;  %v463_v2 = vstv %s1388_s18  ;;  %v466_v34 = vstv %s1390_s0  ;;  %s1428_s26 = sld [smem:[#allocation2 + $0x82]] }
  0xa9   :  { %v436_v35 = vmul.f32 %v435_v22, %v1273_v38  ;;  %v439_v36 = vmul.f32 %v438_v23, %v1278_v41  ;;  %v477_v37 = vstv %s1399_s21  ;;  %v480_v39 = vstv %s1401_s22  ;;  %s1434_s27 = sld [smem:[#allocation2 + $0x83]] }
  0xaa   :  { %v611_v42 = vmax.f32 %v586_v24, %v605_v1  ;;  %v612_v43 = vmin.f32 %v587_v0, %v610_v25  ;;  %v630_v44 = vmul.f32 %v629_v29, %v627_v26  ;;  %v635_v45 = vadd.f32 %v634_v31, %v632_v30  ;;  %s1440_s29 = sld [smem:[#allocation2 + $0x96]] }
  0xab   :  { %v450_v4 = vmul.f32 %v449_v32, %v1273_v38  ;;  %v453_v47 = vmul.f32 %v452_v33, %v1278_v41  ;;  %v456_v48 = vstv %s1403_s1  ;;  %v470_v49 = vstv %s1405_s23  ;;  %s1443_s30 = sld [smem:[#allocation2 + $0x97]] }
  0xac   :  { %v464_v50 = vmul.f32 %v463_v2, %v1273_v38  ;;  %v467_v51 = vmul.f32 %v466_v34, %v1278_v41  ;;  %v478_v52 = vmul.f32 %v477_v37, %v1273_v38  ;;  %v481_v53 = vmul.f32 %v480_v39, %v1278_v41  ;;  %s1446_s3 = sld [smem:[#allocation2 + $0x98]] }
  0xad   :  { %v484_v54 = vstv %s1411_s24  ;;  %v440_v55 = vadd.f32 %v439_v36, %v436_v35  ;;  %v443_v56 = vmul.f32 %v442_v27, %v1288_v46  ;;  %v636_v57 = vmax.f32 %v611_v42, %v630_v44  ;;  %s1450_s4 = sld [smem:[#allocation2 + $0x99]] }
  0xae   :  { %v637_v58 = vmin.f32 %v612_v43, %v635_v45  ;;  %v457_v59 = vmul.f32 %v456_v48, %v1288_v46  ;;  %v471_v38 = vmul.f32 %v470_v49, %v1288_v46  ;;  %v454_v41 = vadd.f32 %v453_v47, %v450_v4 }
  0xaf   :  { %v468_v60 = vadd.f32 %v467_v51, %v464_v50  ;;  %v482_v61 = vadd.f32 %v481_v53, %v478_v52  ;;  %v485_v62 = vmul.f32 %v484_v54, %v1288_v46  ;;  %v444_v3 = vadd.f32 %v443_v56, %v440_v55 }
  0xb0   :  { %v654_v28 = vsub.f32 %v637_v58, %v636_v57  ;;  %v446_v6 = vstv %s1416_s25  ;;  %v458_v7 = vadd.f32 %v457_v59, %v454_v41  ;;  %v460_v11 = vstv %s1424_s28 }
  0xb1   :  { %v472_v8 = vadd.f32 %v471_v38, %v468_v60  ;;  %v486_v9 = vadd.f32 %v485_v62, %v482_v61  ;;  %v474_v12 = vstv %s1428_s26  ;;  %v488_v13 = vstv %s1434_s27 }
  0xb2   :  { %v447_v14 = vadd.f32 %v446_v6, %v444_v3  ;;  %v658_v16 = vstv %s1440_s29  ;;  %v662_v17 = vstv %s1443_s30  ;;  %v666_v46 = vstv %s1446_s3 }
  0xb3   :  { %v670_v18 = vstv %s1450_s4  ;;  %v461_v19 = vadd.f32 %v460_v11, %v458_v7  ;;  %v475_v20 = vadd.f32 %v474_v12, %v472_v8  ;;  %v489_v40 = vadd.f32 %v488_v13, %v486_v9 }
  0xb4   :  { %v863_v63 = vpop.eup %862 }
  0xb5   :  { %v652_v5 = vmul.f32 0.5, %v863_v63 }
  0xb7   :  { %v653_v10 = vadd.f32 0.5, %v652_v5 }
  0xb9   :  { %v655_v15 = vmul.f32 %v654_v28, %v653_v10 }
  0xbb   :  { %v656_v21 = vadd.f32 %v655_v15, %v636_v57 }
  0xbd   :  { %v659_v22 = vmul.f32 %v658_v16, %v656_v21  ;;  %v663_v23 = vmul.f32 %v662_v17, %v656_v21  ;;  %v667_v24 = vmul.f32 %v666_v46, %v656_v21  ;;  %v671_v0 = vmul.f32 %v670_v18, %v656_v21 }
  0xbf   :  { %v660_v1 = vadd.f32 %v659_v22, %v447_v14  ;;  %v664_v25 = vadd.f32 %v663_v23, %v461_v19  ;;  %v668_v26 = vadd.f32 %v667_v24, %v475_v20  ;;  %v672_v27 = vadd.f32 %v671_v0, %v489_v40 }
  0xc1   :  { %673 = vst [vmem:[#allocation7] sm:$0x1] %v660_v1  ;;  %675 = vst [vmem:[#allocation7 + $0x1] sm:$0x1] %v664_v25 }
  0xc2   :  { %677 = vst [vmem:[#allocation7 + $0x2] sm:$0x1] %v668_v26  ;;  %679 = vst [vmem:[#allocation7 + $0x3] sm:$0x1] %v672_v27 }
  0xc3   :  { %903 = shalt.err (!%p900_p9)
}
  0xc4   :  { %691 = dma.vmem_to_hbm [thread:$0]  %s686_s8, 64, %s1469_s2, [#allocation4], %s920_s15, %s920_s15, %s921_s16  }
  0xc5   :  { %916 = dma.done.wait [#allocation4], 64  }
  0xc6   :  { %917 = vsyncadd [#allocation4], 4294967232 }
  0xc7   :  { %695 = vsyncpa [#allocation3], 1 }
  0xc8   :  { %696 = vsyncpa [#allocation4], 1 }
  0xc9   :  { %697 = vsyncpa [#allocation5], 1 }

</bundles_post_ra>
